<compile_context>
chip_gen: v7x
topology: tpu7x:2x2x1
jax: 0.10.0
libtpu: 0.0.40
codegen_flags: <defaults>
</compile_context>

<pallas_src>
import functools

import numpy as np

import jax
import jax.numpy as jnp
from jax.experimental import pallas as pl
from jax.experimental.pallas import tpu as pltpu


# ----------------------------------------------------------------------------
# Fused Pallas kernel:
#   conv3x3(pad=1)+bias+ReLU -> Linear head -> chunk/softplus/rsample -> Linear decoder
# ----------------------------------------------------------------------------
def _vae_fused_kernel(xm_ref, taps_ref, cbias_ref, encw_ref, encb_ref,
                      decw_ref, decb_ref, eps_ref,
                      rec_ref, mu_ref, sigma_ref,
                      featT_ref,
                      *, np_batch, h, lat_pad, min_stddev):
    nh = np_batch * h                 # conv-output rows, ordered (h, batch)
    wo = cbias_ref.shape[1]           # W*OC lanes (128 at toy shapes)

    # --- Conv2d(3x3, pad=1) + bias + ReLU: 3 row-shifted bf16 MXU matmuls ----
    # xm rows are (h_padded, batch), cols are 128-lane-padded (w_padded, c);
    # shifting the row window by i*np_batch selects kernel row i; taps_ref[i] is
    # the banded (128, W*OC) weight matrix for that kernel row.  xm is already
    # bf16 (staged that way in the wrapper) -> no per-window casts here.
    acc = jnp.dot(xm_ref[0:nh, :], taps_ref[0],
                  preferred_element_type=jnp.float32)
    for i in range(1, 3):
        acc = acc + jnp.dot(xm_ref[i * np_batch:i * np_batch + nh, :],
                            taps_ref[i], preferred_element_type=jnp.float32)
    # Bias + ReLU in f32 (v5e has no bf16 VALU), then ONE cast to bf16.
    featb = jnp.maximum(acc + cbias_ref[...], 0.0).astype(jnp.bfloat16)

    # --- Re-layout (h, batch)-ordered rows -> (batch, h*W*OC) lanes ----------
    # 16 tile-aligned (8,128) slice copies into a VMEM scratch; both sides are
    # (8,128)-tile aligned so this is plain vld/vst, no relayout or masking.
    for hh in range(h):
        featT_ref[:, hh * wo:(hh + 1) * wo] = featb[hh * np_batch:(hh + 1) * np_batch, :]

    # --- Encoder head: single MXU contraction over the full H*W*OC dim -------
    # encw is lane-padded: cols [0, lat_pad) hold the mu weights (real ones in
    # [0, latent)), cols [lat_pad, 2*lat_pad) hold the sigma weights.
    ms = jnp.dot(featT_ref[...], encw_ref[...],
                 preferred_element_type=jnp.float32) + encb_ref[...]

    # --- chunk + softplus + Normal(mu, sigma).rsample() (fused, VPU/EUP) -----
    mu_pad = ms[:, :lat_pad]                          # zeros beyond latent
    sigma_pad = jax.nn.softplus(ms[:, lat_pad:]) + min_stddev
    z_pad = mu_pad + sigma_pad * eps_ref[...]         # eps zero beyond latent -> z zero there
    mu_ref[...] = mu_pad                              # full-lane (8,128) stores
    sigma_ref[...] = sigma_pad

    # --- Decoder Linear(latent -> C*H*W), lane-dense 128-wide contraction ----
    rec_ref[...] = jnp.dot(z_pad.astype(jnp.bfloat16), decw_ref[...],
                           preferred_element_type=jnp.float32) + decb_ref[...]


# ----------------------------------------------------------------------------
# Parameter creation (canonical PyTorch layouts)
# ----------------------------------------------------------------------------
def make_params(key, *, in_ch, conv_ch, h, w, latent):
    ks = jax.random.split(key, 6)
    s = 0.05
    return dict(
        conv_w=s * jax.random.normal(ks[0], (conv_ch, in_ch, 3, 3), jnp.float32),
        conv_b=s * jax.random.normal(ks[1], (conv_ch,), jnp.float32),
        enc_w=s * jax.random.normal(ks[2], (conv_ch * h * w, 2 * latent), jnp.float32),
        enc_b=s * jax.random.normal(ks[3], (2 * latent,), jnp.float32),
        dec_w=s * jax.random.normal(ks[4], (latent, in_ch * h * w), jnp.float32),
        dec_b=s * jax.random.normal(ks[5], (in_ch * h * w,), jnp.float32),
    )


# ----------------------------------------------------------------------------
# One-time host-side repack of canonical weights into kernel layouts
# ----------------------------------------------------------------------------
def prepare_kernel_params(params, *, h, w, latent, lat_pad=128):
    conv_w = np.asarray(params["conv_w"], np.float32)     # (OC, C, 3, 3)
    oc, c = conv_w.shape[0], conv_w.shape[1]

    # Banded conv tap matrices with a lane-aligned 128-row contraction:
    # taps[i, (wi+j)*C + cc, wi*OC + o] = conv_w[o, cc, i, j]; rows beyond (W+2)*C are zero.
    xm_cols = (w + 2) * c
    xm_cols_p = ((xm_cols + 127) // 128) * 128
    taps = np.zeros((3, xm_cols_p, w * oc), np.float32)
    for i in range(3):
        for j in range(3):
            blk = conv_w[:, :, i, j].T                    # (C, OC)
            for wi in range(w):
                taps[i, (wi + j) * c:(wi + j + 1) * c,
                     wi * oc:(wi + 1) * oc] = blk

    conv_bias_row = np.tile(np.asarray(params["conv_b"], np.float32), w)[None, :]

    # enc_w rows are torch (oc, h, w)-flatten order -> repack to (h*w*oc, 2*lat_pad)
    # with mu weights in cols [0, latent) and sigma weights in cols [lat_pad, lat_pad+latent).
    enc_w = np.asarray(params["enc_w"], np.float32).reshape(oc, h, w, 2 * latent)
    enc_w_hwo = np.transpose(enc_w, (1, 2, 0, 3)).reshape(h * w * oc, 2 * latent)
    enc_w_pad = np.zeros((h * w * oc, 2 * lat_pad), np.float32)
    enc_w_pad[:, :latent] = enc_w_hwo[:, :latent]
    enc_w_pad[:, lat_pad:lat_pad + latent] = enc_w_hwo[:, latent:]

    enc_b = np.asarray(params["enc_b"], np.float32)
    enc_b_pad = np.zeros((1, 2 * lat_pad), np.float32)
    enc_b_pad[0, :latent] = enc_b[:latent]
    enc_b_pad[0, lat_pad:lat_pad + latent] = enc_b[latent:]

    # Decoder weight padded to a 128-row (lane-dense) contraction; extra rows are zero.
    dec_w = np.asarray(params["dec_w"], np.float32)       # (latent, C*H*W)
    dec_w_pad = np.zeros((lat_pad, dec_w.shape[1]), np.float32)
    dec_w_pad[:latent] = dec_w

    return dict(
        conv_taps=jnp.asarray(taps, dtype=jnp.bfloat16),
        conv_bias_row=jnp.asarray(conv_bias_row, dtype=jnp.float32),
        enc_w_k=jnp.asarray(enc_w_pad, dtype=jnp.bfloat16),
        enc_b_row=jnp.asarray(enc_b_pad, dtype=jnp.float32),
        dec_w_k=jnp.asarray(dec_w_pad, dtype=jnp.bfloat16),
        dec_b_row=jnp.asarray(np.asarray(params["dec_b"], np.float32)[None, :]),
    )


# ----------------------------------------------------------------------------
# VAE forward (single fused pallas_call)
# ----------------------------------------------------------------------------
def vae_forward(kparams, x, eps, *, min_stddev=1e-7, lat_pad=128):
    """x: (N, C, H, W) float32, eps: (N, latent) ~ N(0,1) for rsample.
    Returns (x_reconstructed (N,C,H,W), (mu, sigma))."""
    n, c, h, w = x.shape
    latent = eps.shape[1]
    np_b = max(8, ((n + 7) // 8) * 8)          # pad batch to full sublanes
    wo = kparams["conv_bias_row"].shape[1]     # W*OC
    xm_cols = (w + 2) * c
    lane_pad = (-xm_cols) % 128

    # Cheap input staging (pad + transpose + reshape only; no 9x im2col), emitted
    # directly in bf16 so the kernel's conv LHS needs no casts and half the DMA bytes.
    # Rows ordered (h, batch) so the 3 conv taps are plain 8-aligned row shifts.
    # TODO(synk): at production shapes, pass x with memory_space=pl.ANY and DMA
    # (h, batch)-row slabs inside the kernel instead of this extra XLA staging pass.
    xp = jnp.pad(x, ((0, np_b - n), (0, 0), (0, 0), (1, 1)))       # pad batch & W
    xm = jnp.transpose(xp, (2, 0, 3, 1)).reshape(h * np_b, xm_cols)
    xm = jnp.pad(xm, ((np_b, np_b), (0, lane_pad))).astype(jnp.bfloat16)  # pad H rows + lanes

    # eps lane-padded to 128 so z (and the decoder LHS) stays lane-dense.
    eps_pad = jnp.zeros((np_b, lat_pad), jnp.float32)
    eps_pad = eps_pad.at[:n, :latent].set(eps.astype(jnp.float32))

    kernel = functools.partial(_vae_fused_kernel, np_batch=np_b, h=h,
                               lat_pad=lat_pad, min_stddev=min_stddev)
    vmem = pl.BlockSpec(memory_space=pltpu.MemorySpace.VMEM)
    rec_flat, mu_p, sigma_p = pl.pallas_call(
        kernel,
        out_shape=(jax.ShapeDtypeStruct((np_b, c * h * w), jnp.float32),
                   jax.ShapeDtypeStruct((np_b, lat_pad), jnp.float32),
                   jax.ShapeDtypeStruct((np_b, lat_pad), jnp.float32)),
        in_specs=[vmem] * 8,
        out_specs=(vmem, vmem, vmem),
        scratch_shapes=[pltpu.VMEM((np_b, h * wo), jnp.bfloat16)],   # featT
    )(xm, kparams["conv_taps"], kparams["conv_bias_row"],
      kparams["enc_w_k"], kparams["enc_b_row"],
      kparams["dec_w_k"], kparams["dec_b_row"], eps_pad)

    x_rec = rec_flat[:n].reshape(n, c, h, w)
    # TODO(synk): torch.distributions.Normal has no JAX object equivalent; the
    # posterior is returned as its (mu, sigma) parameters.
    return x_rec, (mu_p[:n, :latent], sigma_p[:n, :latent])


# ----------------------------------------------------------------------------
# Pure-JAX f32 reference (for numerical validation of the fused kernel)
# ----------------------------------------------------------------------------
def vae_reference(params, x, eps, *, min_stddev=1e-7):
    n, c, h, w = x.shape
    latent = eps.shape[1]
    y = jax.lax.conv_general_dilated(
        x, params["conv_w"], window_strides=(1, 1), padding="SAME",
        dimension_numbers=("NCHW", "OIHW", "NCHW"))
    y = jnp.maximum(y + params["conv_b"][None, :, None, None], 0.0)
    feat = y.reshape(n, -1)                          # torch channel-major flatten
    ms = feat @ params["enc_w"] + params["enc_b"]
    mu = ms[:, :latent]
    sigma = jax.nn.softplus(ms[:, latent:]) + min_stddev
    z = mu + sigma * eps
    rec = (z @ params["dec_w"] + params["dec_b"]).reshape(n, c, h, w)
    return rec, mu, sigma


# ----------------------------------------------------------------------------
if __name__ == "__main__":
    N, C, H, W = 2, 4, 16, 16
    CONV_CH = 8
    LATENT = 16
    MIN_STDDEV = 1e-7

    key = jax.random.PRNGKey(0)
    k_params, k_x, k_eps = jax.random.split(key, 3)

    params = make_params(k_params, in_ch=C, conv_ch=CONV_CH, h=H, w=W,
                         latent=LATENT)
    kparams = prepare_kernel_params(params, h=H, w=W, latent=LATENT)

    x = jax.random.normal(k_x, (N, C, H, W), jnp.float32)
    eps = jax.random.normal(k_eps, (N, LATENT), jnp.float32)

    fwd = jax.jit(functools.partial(vae_forward, min_stddev=MIN_STDDEV))
    x_rec, (mu, sigma) = fwd(kparams, x, eps)
    jax.block_until_ready((x_rec, mu, sigma))

    # shape / sanity checks
    assert x_rec.shape == (N, C, H, W)
    assert mu.shape == (N, LATENT) and sigma.shape == (N, LATENT)
    assert bool(jnp.all(sigma > 0.0))
    assert bool(jnp.all(jnp.isfinite(x_rec)))

    # numerical check vs. a pure-JAX f32 reference (kernel uses bf16 MXU operands
    # with f32 accumulation over a 2048-long contraction -> ~1e-2 expected error).
    rec_r, mu_r, sigma_r = vae_reference(params, x, eps, min_stddev=MIN_STDDEV)
    for got, ref in ((x_rec, rec_r), (mu, mu_r), (sigma, sigma_r)):
        assert float(jnp.max(jnp.abs(got - ref))) < 2e-2

    print("KERNEL_OK")
</pallas_src>

<mosaic_0001>
module attributes {stable_mosaic.version = 11 : i64} {
  func.func @_vae_fused_kernel(%arg0: memref<144x128xbf16, #tpu.memory_space<vmem>>, %arg1: memref<3x128x128xbf16, #tpu.memory_space<vmem>>, %arg2: memref<1x128xf32, #tpu.memory_space<vmem>>, %arg3: memref<2048x256xbf16, #tpu.memory_space<vmem>>, %arg4: memref<1x256xf32, #tpu.memory_space<vmem>>, %arg5: memref<128x1024xbf16, #tpu.memory_space<vmem>>, %arg6: memref<1x1024xf32, #tpu.memory_space<vmem>>, %arg7: memref<8x128xf32, #tpu.memory_space<vmem>>, %arg8: memref<8x1024xf32, #tpu.memory_space<vmem>>, %arg9: memref<8x128xf32, #tpu.memory_space<vmem>>, %arg10: memref<8x128xf32, #tpu.memory_space<vmem>>, %arg11: memref<8x2048xbf16, #tpu.memory_space<vmem>>) attributes {dimension_semantics = [], scalar_prefetch = 0 : i64, scratch_operands = 1 : i64, tpu.core_type = #tpu.core_type<tc>} {
    %c0 = arith.constant 0 : index
    %c0_0 = arith.constant 0 : index
    %0 = vector.load %arg0[%c0, %c0_0] : memref<144x128xbf16, #tpu.memory_space<vmem>>, vector<128x128xbf16>
    %c0_1 = arith.constant 0 : index
    %c0_2 = arith.constant 0 : index
    %c0_3 = arith.constant 0 : index
    %1 = vector.load %arg1[%c0_1, %c0_2, %c0_3] : memref<3x128x128xbf16, #tpu.memory_space<vmem>>, vector<1x128x128xbf16>
    %2 = vector.shape_cast %1 : vector<1x128x128xbf16> to vector<128x128xbf16>
    %cst = arith.constant dense<0.000000e+00> : vector<128x128xf32>
    %3 = tpu.matmul %0, %2, %cst {dimension_numbers = #tpu.dot_dimension_numbers<[1], [0], [0], [1], [0, 0, 1, 1], [], []>} : vector<128x128xbf16>, vector<128x128xbf16>, vector<128x128xf32> -> vector<128x128xf32>
    %c8 = arith.constant 8 : index
    %c0_4 = arith.constant 0 : index
    %4 = vector.load %arg0[%c8, %c0_4] : memref<144x128xbf16, #tpu.memory_space<vmem>>, vector<128x128xbf16>
    %c1 = arith.constant 1 : index
    %c0_5 = arith.constant 0 : index
    %c0_6 = arith.constant 0 : index
    %5 = vector.load %arg1[%c1, %c0_5, %c0_6] : memref<3x128x128xbf16, #tpu.memory_space<vmem>>, vector<1x128x128xbf16>
    %6 = vector.shape_cast %5 : vector<1x128x128xbf16> to vector<128x128xbf16>
    %cst_7 = arith.constant dense<0.000000e+00> : vector<128x128xf32>
    %7 = tpu.matmul %4, %6, %cst_7 {dimension_numbers = #tpu.dot_dimension_numbers<[1], [0], [0], [1], [0, 0, 1, 1], [], []>} : vector<128x128xbf16>, vector<128x128xbf16>, vector<128x128xf32> -> vector<128x128xf32>
    %8 = arith.addf %3, %7 : vector<128x128xf32>
    %c16 = arith.constant 16 : index
    %c0_8 = arith.constant 0 : index
    %9 = vector.load %arg0[%c16, %c0_8] : memref<144x128xbf16, #tpu.memory_space<vmem>>, vector<128x128xbf16>
    %c2 = arith.constant 2 : index
    %c0_9 = arith.constant 0 : index
    %c0_10 = arith.constant 0 : index
    %10 = vector.load %arg1[%c2, %c0_9, %c0_10] : memref<3x128x128xbf16, #tpu.memory_space<vmem>>, vector<1x128x128xbf16>
    %11 = vector.shape_cast %10 : vector<1x128x128xbf16> to vector<128x128xbf16>
    %cst_11 = arith.constant dense<0.000000e+00> : vector<128x128xf32>
    %12 = tpu.matmul %9, %11, %cst_11 {dimension_numbers = #tpu.dot_dimension_numbers<[1], [0], [0], [1], [0, 0, 1, 1], [], []>} : vector<128x128xbf16>, vector<128x128xbf16>, vector<128x128xf32> -> vector<128x128xf32>
    %13 = arith.addf %8, %12 : vector<128x128xf32>
    %c0_12 = arith.constant 0 : index
    %c0_13 = arith.constant 0 : index
    %14 = vector.load %arg2[%c0_12, %c0_13] : memref<1x128xf32, #tpu.memory_space<vmem>>, vector<1x128xf32>
    %15 = vector.broadcast %14 : vector<1x128xf32> to vector<128x128xf32>
    %16 = arith.addf %13, %15 : vector<128x128xf32>
    %cst_14 = arith.constant 0.000000e+00 : f32
    %17 = vector.broadcast %cst_14 : f32 to vector<128x128xf32>
    %18 = arith.maximumf %16, %17 : vector<128x128xf32>
    %19 = arith.truncf %18 : vector<128x128xf32> to vector<128x128xbf16>
    %20 = vector.extract_strided_slice %19 {offsets = [0, 0], sizes = [8, 128], strides = [1, 1]} : vector<128x128xbf16> to vector<8x128xbf16>
    %c0_15 = arith.constant 0 : index
    %c0_16 = arith.constant 0 : index
    %21 = vector.load %arg11[%c0_15, %c0_16] : memref<8x2048xbf16, #tpu.memory_space<vmem>>, vector<8x128xbf16>
    tpu.vector_store %arg11[%c0_15, %c0_16], %20 {strides = array<i32>} : memref<8x2048xbf16, #tpu.memory_space<vmem>>, vector<8x128xbf16>,
    %22 = vector.extract_strided_slice %19 {offsets = [8, 0], sizes = [8, 128], strides = [1, 1]} : vector<128x128xbf16> to vector<8x128xbf16>
    %c0_17 = arith.constant 0 : index
    %c128 = arith.constant 128 : index
    %23 = vector.load %arg11[%c0_17, %c128] : memref<8x2048xbf16, #tpu.memory_space<vmem>>, vector<8x128xbf16>
    tpu.vector_store %arg11[%c0_17, %c128], %22 {strides = array<i32>} : memref<8x2048xbf16, #tpu.memory_space<vmem>>, vector<8x128xbf16>,
    %24 = vector.extract_strided_slice %19 {offsets = [16, 0], sizes = [8, 128], strides = [1, 1]} : vector<128x128xbf16> to vector<8x128xbf16>
    %c0_18 = arith.constant 0 : index
    %c256 = arith.constant 256 : index
    %25 = vector.load %arg11[%c0_18, %c256] : memref<8x2048xbf16, #tpu.memory_space<vmem>>, vector<8x128xbf16>
    tpu.vector_store %arg11[%c0_18, %c256], %24 {strides = array<i32>} : memref<8x2048xbf16, #tpu.memory_space<vmem>>, vector<8x128xbf16>,
    %26 = vector.extract_strided_slice %19 {offsets = [24, 0], sizes = [8, 128], strides = [1, 1]} : vector<128x128xbf16> to vector<8x128xbf16>
    %c0_19 = arith.constant 0 : index
    %c384 = arith.constant 384 : index
    %27 = vector.load %arg11[%c0_19, %c384] : memref<8x2048xbf16, #tpu.memory_space<vmem>>, vector<8x128xbf16>
    tpu.vector_store %arg11[%c0_19, %c384], %26 {strides = array<i32>} : memref<8x2048xbf16, #tpu.memory_space<vmem>>, vector<8x128xbf16>,
    %28 = vector.extract_strided_slice %19 {offsets = [32, 0], sizes = [8, 128], strides = [1, 1]} : vector<128x128xbf16> to vector<8x128xbf16>
    %c0_20 = arith.constant 0 : index
    %c512 = arith.constant 512 : index
    %29 = vector.load %arg11[%c0_20, %c512] : memref<8x2048xbf16, #tpu.memory_space<vmem>>, vector<8x128xbf16>
    tpu.vector_store %arg11[%c0_20, %c512], %28 {strides = array<i32>} : memref<8x2048xbf16, #tpu.memory_space<vmem>>, vector<8x128xbf16>,
    %30 = vector.extract_strided_slice %19 {offsets = [40, 0], sizes = [8, 128], strides = [1, 1]} : vector<128x128xbf16> to vector<8x128xbf16>
    %c0_21 = arith.constant 0 : index
    %c640 = arith.constant 640 : index
    %31 = vector.load %arg11[%c0_21, %c640] : memref<8x2048xbf16, #tpu.memory_space<vmem>>, vector<8x128xbf16>
    tpu.vector_store %arg11[%c0_21, %c640], %30 {strides = array<i32>} : memref<8x2048xbf16, #tpu.memory_space<vmem>>, vector<8x128xbf16>,
    %32 = vector.extract_strided_slice %19 {offsets = [48, 0], sizes = [8, 128], strides = [1, 1]} : vector<128x128xbf16> to vector<8x128xbf16>
    %c0_22 = arith.constant 0 : index
    %c768 = arith.constant 768 : index
    %33 = vector.load %arg11[%c0_22, %c768] : memref<8x2048xbf16, #tpu.memory_space<vmem>>, vector<8x128xbf16>
    tpu.vector_store %arg11[%c0_22, %c768], %32 {strides = array<i32>} : memref<8x2048xbf16, #tpu.memory_space<vmem>>, vector<8x128xbf16>,
    %34 = vector.extract_strided_slice %19 {offsets = [56, 0], sizes = [8, 128], strides = [1, 1]} : vector<128x128xbf16> to vector<8x128xbf16>
    %c0_23 = arith.constant 0 : index
    %c896 = arith.constant 896 : index
    %35 = vector.load %arg11[%c0_23, %c896] : memref<8x2048xbf16, #tpu.memory_space<vmem>>, vector<8x128xbf16>
    tpu.vector_store %arg11[%c0_23, %c896], %34 {strides = array<i32>} : memref<8x2048xbf16, #tpu.memory_space<vmem>>, vector<8x128xbf16>,
    %36 = vector.extract_strided_slice %19 {offsets = [64, 0], sizes = [8, 128], strides = [1, 1]} : vector<128x128xbf16> to vector<8x128xbf16>
    %c0_24 = arith.constant 0 : index
    %c1024 = arith.constant 1024 : index
    %37 = vector.load %arg11[%c0_24, %c1024] : memref<8x2048xbf16, #tpu.memory_space<vmem>>, vector<8x128xbf16>
    tpu.vector_store %arg11[%c0_24, %c1024], %36 {strides = array<i32>} : memref<8x2048xbf16, #tpu.memory_space<vmem>>, vector<8x128xbf16>,
    %38 = vector.extract_strided_slice %19 {offsets = [72, 0], sizes = [8, 128], strides = [1, 1]} : vector<128x128xbf16> to vector<8x128xbf16>
    %c0_25 = arith.constant 0 : index
    %c1152 = arith.constant 1152 : index
    %39 = vector.load %arg11[%c0_25, %c1152] : memref<8x2048xbf16, #tpu.memory_space<vmem>>, vector<8x128xbf16>
    tpu.vector_store %arg11[%c0_25, %c1152], %38 {strides = array<i32>} : memref<8x2048xbf16, #tpu.memory_space<vmem>>, vector<8x128xbf16>,
    %40 = vector.extract_strided_slice %19 {offsets = [80, 0], sizes = [8, 128], strides = [1, 1]} : vector<128x128xbf16> to vector<8x128xbf16>
    %c0_26 = arith.constant 0 : index
    %c1280 = arith.constant 1280 : index
    %41 = vector.load %arg11[%c0_26, %c1280] : memref<8x2048xbf16, #tpu.memory_space<vmem>>, vector<8x128xbf16>
    tpu.vector_store %arg11[%c0_26, %c1280], %40 {strides = array<i32>} : memref<8x2048xbf16, #tpu.memory_space<vmem>>, vector<8x128xbf16>,
    %42 = vector.extract_strided_slice %19 {offsets = [88, 0], sizes = [8, 128], strides = [1, 1]} : vector<128x128xbf16> to vector<8x128xbf16>
    %c0_27 = arith.constant 0 : index
    %c1408 = arith.constant 1408 : index
    %43 = vector.load %arg11[%c0_27, %c1408] : memref<8x2048xbf16, #tpu.memory_space<vmem>>, vector<8x128xbf16>
    tpu.vector_store %arg11[%c0_27, %c1408], %42 {strides = array<i32>} : memref<8x2048xbf16, #tpu.memory_space<vmem>>, vector<8x128xbf16>,
    %44 = vector.extract_strided_slice %19 {offsets = [96, 0], sizes = [8, 128], strides = [1, 1]} : vector<128x128xbf16> to vector<8x128xbf16>
    %c0_28 = arith.constant 0 : index
    %c1536 = arith.constant 1536 : index
    %45 = vector.load %arg11[%c0_28, %c1536] : memref<8x2048xbf16, #tpu.memory_space<vmem>>, vector<8x128xbf16>
    tpu.vector_store %arg11[%c0_28, %c1536], %44 {strides = array<i32>} : memref<8x2048xbf16, #tpu.memory_space<vmem>>, vector<8x128xbf16>,
    %46 = vector.extract_strided_slice %19 {offsets = [104, 0], sizes = [8, 128], strides = [1, 1]} : vector<128x128xbf16> to vector<8x128xbf16>
    %c0_29 = arith.constant 0 : index
    %c1664 = arith.constant 1664 : index
    %47 = vector.load %arg11[%c0_29, %c1664] : memref<8x2048xbf16, #tpu.memory_space<vmem>>, vector<8x128xbf16>
    tpu.vector_store %arg11[%c0_29, %c1664], %46 {strides = array<i32>} : memref<8x2048xbf16, #tpu.memory_space<vmem>>, vector<8x128xbf16>,
    %48 = vector.extract_strided_slice %19 {offsets = [112, 0], sizes = [8, 128], strides = [1, 1]} : vector<128x128xbf16> to vector<8x128xbf16>
    %c0_30 = arith.constant 0 : index
    %c1792 = arith.constant 1792 : index
    %49 = vector.load %arg11[%c0_30, %c1792] : memref<8x2048xbf16, #tpu.memory_space<vmem>>, vector<8x128xbf16>
    tpu.vector_store %arg11[%c0_30, %c1792], %48 {strides = array<i32>} : memref<8x2048xbf16, #tpu.memory_space<vmem>>, vector<8x128xbf16>,
    %50 = vector.extract_strided_slice %19 {offsets = [120, 0], sizes = [8, 128], strides = [1, 1]} : vector<128x128xbf16> to vector<8x128xbf16>
    %c0_31 = arith.constant 0 : index
    %c1920 = arith.constant 1920 : index
    %51 = vector.load %arg11[%c0_31, %c1920] : memref<8x2048xbf16, #tpu.memory_space<vmem>>, vector<8x128xbf16>
    tpu.vector_store %arg11[%c0_31, %c1920], %50 {strides = array<i32>} : memref<8x2048xbf16, #tpu.memory_space<vmem>>, vector<8x128xbf16>,
    %c0_32 = arith.constant 0 : index
    %c0_33 = arith.constant 0 : index
    %52 = vector.load %arg11[%c0_32, %c0_33] : memref<8x2048xbf16, #tpu.memory_space<vmem>>, vector<8x2048xbf16>
    %c0_34 = arith.constant 0 : index
    %c0_35 = arith.constant 0 : index
    %53 = vector.load %arg3[%c0_34, %c0_35] : memref<2048x256xbf16, #tpu.memory_space<vmem>>, vector<2048x256xbf16>
    %cst_36 = arith.constant dense<0.000000e+00> : vector<8x256xf32>
    %54 = tpu.matmul %52, %53, %cst_36 {dimension_numbers = #tpu.dot_dimension_numbers<[1], [0], [0], [1], [0, 0, 1, 1], [], []>} : vector<8x2048xbf16>, vector<2048x256xbf16>, vector<8x256xf32> -> vector<8x256xf32>
    %c0_37 = arith.constant 0 : index
    %c0_38 = arith.constant 0 : index
    %55 = vector.load %arg4[%c0_37, %c0_38] : memref<1x256xf32, #tpu.memory_space<vmem>>, vector<1x256xf32>
    %56 = vector.broadcast %55 : vector<1x256xf32> to vector<8x256xf32>
    %57 = arith.addf %54, %56 : vector<8x256xf32>
    %58 = vector.extract_strided_slice %57 {offsets = [0, 0], sizes = [8, 128], strides = [1, 1]} : vector<8x256xf32> to vector<8x128xf32>
    %59 = vector.extract_strided_slice %57 {offsets = [0, 128], sizes = [8, 128], strides = [1, 1]} : vector<8x256xf32> to vector<8x128xf32>
    %cst_39 = arith.constant 0.000000e+00 : f32
    %60 = vector.broadcast %cst_39 : f32 to vector<8x128xf32>
    %61 = arith.maximumf %59, %60 : vector<8x128xf32>
    %62 = vector.broadcast %cst_39 : f32 to vector<8x128xf32>
    %63 = arith.subf %59, %62 : vector<8x128xf32>
    %64 = arith.cmpf one, %63, %63 : vector<8x128xf32>
    %65 = vector.broadcast %cst_39 : f32 to vector<8x128xf32>
    %66 = arith.addf %59, %65 : vector<8x128xf32>
    %67 = math.absf %63 : vector<8x128xf32>
    %cst_40 = arith.constant 0.000000e+00 : f32
    %68 = vector.broadcast %cst_40 : f32 to vector<8x128xf32>
    %69 = arith.subf %68, %67 : vector<8x128xf32>
    %70 = math.exp %69 : vector<8x128xf32>
    %71 = math.log1p %70 : vector<8x128xf32>
    %72 = arith.addf %61, %71 : vector<8x128xf32>
    %73 = arith.select %64, %66, %72 : vector<8x128xi1>, vector<8x128xf32>
    %cst_41 = arith.constant 1.000000e-07 : f32
    %74 = vector.broadcast %cst_41 : f32 to vector<8x128xf32>
    %75 = arith.addf %73, %74 : vector<8x128xf32>
    %c0_42 = arith.constant 0 : index
    %c0_43 = arith.constant 0 : index
    %76 = vector.load %arg7[%c0_42, %c0_43] : memref<8x128xf32, #tpu.memory_space<vmem>>, vector<8x128xf32>
    %77 = arith.mulf %75, %76 : vector<8x128xf32>
    %78 = arith.addf %58, %77 : vector<8x128xf32>
    %c0_44 = arith.constant 0 : index
    %c0_45 = arith.constant 0 : index
    %79 = vector.load %arg9[%c0_44, %c0_45] : memref<8x128xf32, #tpu.memory_space<vmem>>, vector<8x128xf32>
    tpu.vector_store %arg9[%c0_44, %c0_45], %58 {strides = array<i32>} : memref<8x128xf32, #tpu.memory_space<vmem>>, vector<8x128xf32>,
    %c0_46 = arith.constant 0 : index
    %c0_47 = arith.constant 0 : index
    %80 = vector.load %arg10[%c0_46, %c0_47] : memref<8x128xf32, #tpu.memory_space<vmem>>, vector<8x128xf32>
    tpu.vector_store %arg10[%c0_46, %c0_47], %75 {strides = array<i32>} : memref<8x128xf32, #tpu.memory_space<vmem>>, vector<8x128xf32>,
    %81 = arith.truncf %78 : vector<8x128xf32> to vector<8x128xbf16>
    %c0_48 = arith.constant 0 : index
    %c0_49 = arith.constant 0 : index
    %82 = vector.load %arg5[%c0_48, %c0_49] : memref<128x1024xbf16, #tpu.memory_space<vmem>>, vector<128x1024xbf16>
    %cst_50 = arith.constant dense<0.000000e+00> : vector<8x1024xf32>
    %83 = tpu.matmul %81, %82, %cst_50 {dimension_numbers = #tpu.dot_dimension_numbers<[1], [0], [0], [1], [0, 0, 1, 1], [], []>} : vector<8x128xbf16>, vector<128x1024xbf16>, vector<8x1024xf32> -> vector<8x1024xf32>
    %c0_51 = arith.constant 0 : index
    %c0_52 = arith.constant 0 : index
    %84 = vector.load %arg6[%c0_51, %c0_52] : memref<1x1024xf32, #tpu.memory_space<vmem>>, vector<1x1024xf32>
    %85 = vector.broadcast %84 : vector<1x1024xf32> to vector<8x1024xf32>
    %86 = arith.addf %83, %85 : vector<8x1024xf32>
    %c0_53 = arith.constant 0 : index
    %c0_54 = arith.constant 0 : index
    %87 = vector.load %arg8[%c0_53, %c0_54] : memref<8x1024xf32, #tpu.memory_space<vmem>>, vector<8x1024xf32>
    tpu.vector_store %arg8[%c0_53, %c0_54], %86 {strides = array<i32>} : memref<8x1024xf32, #tpu.memory_space<vmem>>, vector<8x1024xf32>,
    return
  }
}

</mosaic_0001>

<bundles_post_ra>
// kernel: vae_forward.1
= control target key start
LH: loop header
LB: loop body
LE: loop exit
PB: predicated region body
PF: predicated region fallthrough
CT: control target
= control target key end

     0   :  { %16 = vsyncpa [#allocation4], 0  ;;  %s5653_s0 = inlined_call_operand.vmem [shape: bf16[144,128], index: 0, kind: input, shape index: {}]   ;;  %s5654_s1 = inlined_call_operand.hbm [shape: bf16[3,128,128], index: 1, kind: input, shape index: {}]   ;;  %s5655_s2 = inlined_call_operand.vmem [shape: f32[1,128], index: 2, kind: input, shape index: {}]   ;;  %s5656_s3 = inlined_call_operand.vmem [shape: bf16[2048,256], index: 3, kind: input, shape index: {}]   ;;  %s5657_s4 = inlined_call_operand.vmem [shape: f32[1,256], index: 4, kind: input, shape index: {}]   ;;  %s5658_s5 = inlined_call_operand.hbm [shape: bf16[128,1024], index: 5, kind: input, shape index: {}]   ;;  %s5659_s6 = inlined_call_operand.vmem [shape: f32[1,1024], index: 6, kind: input, shape index: {}]   ;;  %s5660_s7 = inlined_call_operand.vmem [shape: f32[8,128], index: 7, kind: input, shape index: {}]   ;;  %s5661_s8 = inlined_call_operand.vmem [shape: f32[8,1024], index: 8, kind: output, shape index: {0}]   ;;  %s5662_s9 = inlined_call_operand.vmem [shape: f32[8,128], index: 9, kind: output, shape index: {1}]   ;;  %s5663_s10 = inlined_call_operand.vmem [shape: f32[8,128], index: 10, kind: output, shape index: {2}]  }
   0x1   :  { %17 = vsyncpa [#allocation6], 0  ;;  %s4540_s13 = smov [#allocation3]   ;;  %s4492_s17 = scalar_lea.hbm %s5654_s1, 3072 }
   0x2   :  { %s25_s14 = sshll.u32 %s4540_s13, 4  ;;  %p4493_p0 = scmp.ne.s32.totalorder %s5654_s1, %s4492_s17  ;;  %s26_s14 = int_to_ptr.vmem [resolvable:$true] %s25_s14 }
   0x3   :  { %p4496_p1 = scmp.lt.u32.totalorder %s4492_s17, %s5654_s1 }
   0x5   :  { %p4498_p2 = pnand %p4496_p1, %p4493_p0 }
   0x7   :  { %4501 = shalt.err (!%p4498_p2)
}
   0x8   :  { %s4502_s22 = scalar_lea.vmem %s26_s14, 3072  ;;  %p4507_p4 = scmp.lt.s32.totalorder %s26_s14, %s26_s14 }
   0x9   :  { %p4503_p3 = scmp.ne.s32.totalorder %s26_s14, %s4502_s22  ;;  %p4508_p5 = scmp.lt.s32.totalorder %s4502_s22, %s4502_s22 }
   0xb   :  { %p4509_p6 = por %p4508_p5, %p4507_p4 }
   0xd   :  { %p4510_p7 = pnand %p4509_p6, %p4503_p3 }
   0xf   :  { %4513 = shalt.err (!%p4510_p7)
}
  0x10   :  { %s4541_s23 = smov 64   ;;  %s4542_s24 = smov 4  }
  0x11   :  { %31 = dma.hbm_to_vmem [thread:$0]  %s5654_s1, 3072, %s26_s14, [#allocation4], %s4541_s23, %s4541_s23, %s4542_s24  }
  0x12   :  { %s4543_s27 = smov [#allocation5]   ;;  %s4514_s11 = scalar_lea.hbm %s5658_s5, 8192 }
  0x13   :  { %s43_s28 = sshll.u32 %s4543_s27, 4  ;;  %p4515_p8 = scmp.ne.s32.totalorder %s5658_s5, %s4514_s11  ;;  %s44_s28 = int_to_ptr.vmem [resolvable:$true] %s43_s28 }
  0x14   :  { %p4518_p9 = scmp.lt.u32.totalorder %s4514_s11, %s5658_s5 }
  0x16   :  { %p4520_p10 = pnand %p4518_p9, %p4515_p8 }
  0x18   :  { %4523 = shalt.err (!%p4520_p10)
}
  0x19   :  { %s4524_s17 = scalar_lea.vmem %s44_s28, 8192  ;;  %p4529_p12 = scmp.lt.s32.totalorder %s44_s28, %s44_s28 }
  0x1a   :  { %p4525_p11 = scmp.ne.s32.totalorder %s44_s28, %s4524_s17  ;;  %p4530_p13 = scmp.lt.s32.totalorder %s4524_s17, %s4524_s17 }
  0x1c   :  { %p4531_p0 = por %p4530_p13, %p4529_p12 }
  0x1e   :  { %p4532_p1 = pnand %p4531_p0, %p4525_p11 }
  0x20   :  { %4535 = shalt.err (!%p4532_p1)
}
  0x21   :  { %s4544_s1 = smov 512   ;;  %s4545_s14 = smov 32  }
  0x22   :  { %49 = dma.hbm_to_vmem [thread:$0]  %s5658_s5, 8192, %s44_s28, [#allocation6], %s4544_s1, %s4544_s1, %s4545_s14  }
  0x23   :  { %4536 = dma.done.wait [#allocation4], 3072  }
  0x24   :  { %4537 = vsyncadd [#allocation4], 4294964224 }
  0x25   :  { %4538 = dma.done.wait [#allocation6], 8192  }
  0x26   :  { %4539 = vsyncadd [#allocation6], 4294959104  ;;  %v4056_v0 = vld [vmem:[#allocation3 + $0x40] sm:$0xff]   ;;  %v4057_v1 = vld [vmem:[#allocation3 + $0x48] sm:$0xff]  }
  0x27   :  { %3893 = vmatprep.subr.bf16.mxu0 %v4056_v0  ;;  %v4058_v2 = vld [vmem:[#allocation3 + $0x50] sm:$0xff]   ;;  %v4059_v3 = vld [vmem:[#allocation3 + $0x58] sm:$0xff]   ;;  %v4629_v4 = vld [vmem:[%s5653_s0 + $0x4] sm:$0xf] }
  0x28   :  { %3894 = vmatpush3.bf16.msra.mxu0 %v4056_v0  ;;  %v4634_v5 = vld [vmem:[%s5653_s0 + $0x8] sm:$0xf]  ;;  %v4060_v7 = vld [vmem:[#allocation3 + $0x60] sm:$0xff]   ;;  %v4062_v9 = vld [vmem:[#allocation3 + $0x70] sm:$0xff]  }
  0x29   :  { %3895 = vmatprep.subr.bf16.mxu0 %v4057_v1  ;;  %v3381_v6 = vcombine.low %v4629_v4, %v4634_v5  ;;  %v4061_v8 = vld [vmem:[#allocation3 + $0x68] sm:$0xff]   ;;  %v4063_v10 = vld [vmem:[#allocation3 + $0x78] sm:$0xff]   ;;  %v4646_v12 = vld [vmem:[%s5653_s0 + $0x10] sm:$0xf] }
  0x2a   :  { %v4641_v11 = vld [vmem:[%s5653_s0 + $0xc] sm:$0xf]  ;;  %v4068_v13 = vld [vmem:[#allocation3] sm:$0xff]   ;;  %v4651_v14 = vld [vmem:[%s5653_s0 + $0x14] sm:$0xf] }
  0x2b   :  { %3909 = vmatprep.mubr.bf16.mxu0 %v3381_v6  ;;  %v4656_v15 = vld [vmem:[%s5653_s0 + $0x18] sm:$0xf]  ;;  %v3382_v16 = vcombine.low %v4641_v11, %v4646_v12  ;;  %v4069_v18 = vld [vmem:[#allocation3 + $0x8] sm:$0xff]   ;;  %v4665_v19 = vld [vmem:[%s5653_s0 + $0x1c] sm:$0xf]  ;;  %v3398_v55 = vcombine.low %v4634_v5, %v4641_v11  ;;  %v3399_v57 = vcombine.low %v4646_v12, %v4651_v14 }
  0x2c   :  { %3896 = vmatpush3.bf16.msra.mxu0 %v4057_v1  ;;  %v3383_v17 = vcombine.low %v4651_v14, %v4656_v15  ;;  %v4670_v20 = vld [vmem:[%s5653_s0 + $0x20] sm:$0xf]  ;;  %v4072_v21 = vld [vmem:[#allocation3 + $0x10] sm:$0xff]   ;;  %v4675_v22 = vld [vmem:[%s5653_s0 + $0x24] sm:$0xf]  ;;  %v3400_v63 = vcombine.low %v4656_v15, %v4665_v19 }
  0x2d   :  { %3897 = vmatprep.subr.bf16.mxu0 %v4058_v2  ;;  %v4680_v23 = vld [vmem:[%s5653_s0 + $0x28] sm:$0xf]  ;;  %v3384_v24 = vcombine.low %v4665_v19, %v4670_v20  ;;  %v4073_v26 = vld [vmem:[#allocation3 + $0x18] sm:$0xff]   ;;  %v4689_v27 = vld [vmem:[%s5653_s0 + $0x2c] sm:$0xf] }
  0x2e   :  { %v3385_v25 = vcombine.low %v4675_v22, %v4680_v23  ;;  %v4694_v28 = vld [vmem:[%s5653_s0 + $0x30] sm:$0xf]  ;;  %v4076_v29 = vld [vmem:[#allocation3 + $0x20] sm:$0xff]   ;;  %v4705_v32 = vld [vmem:[%s5653_s0 + $0x34] sm:$0xf] }
  0x2f   :  { %v4113_v30 = vld [vmem:[%s5656_s3 + $0x204] ss:$8 sps:$4 sm:$0xff]   ;;  %v4115_v31 = vld [vmem:[%s5656_s3 + $0x200] ss:$8 sps:$4 sm:$0xff]   ;;  %v4710_v33 = vld [vmem:[%s5653_s0 + $0x38] sm:$0xf]  ;;  %v3386_v36 = vcombine.low %v4689_v27, %v4694_v28 }
  0x30   :  { %3898 = vmatpush3.bf16.msra.mxu0 %v4058_v2  ;;  %2498 = vmatprep.subr.bf16.mxu1 %v4113_v30  ;;  %v4119_v34 = vld [vmem:[%s5656_s3 + $0x214] ss:$8 sps:$4 sm:$0xff]   ;;  %v4121_v35 = vld [vmem:[%s5656_s3 + $0x210] ss:$8 sps:$4 sm:$0xff]   ;;  %v3387_v37 = vcombine.low %v4705_v32, %v4710_v33  ;;  %v4125_v38 = vld [vmem:[%s5656_s3 + $0x224] ss:$8 sps:$4 sm:$0xff]   ;;  %v3401_v2 = vcombine.low %v4670_v20, %v4675_v22 }
  0x31   :  { %3899 = vmatprep.subr.bf16.mxu0 %v4059_v3  ;;  %2499 = vmatpush1.bf16.msra.mxu1 %v4115_v31  ;;  %v4077_v39 = vld [vmem:[#allocation3 + $0x28] sm:$0xff]   ;;  %v61_v41 = vld [vmem:[%s5653_s0] sm:$0xf]  ;;  %v4734_v42 = vld [vmem:[%s5653_s0 + $0x3c] sm:$0xf] }
  0x32   :  { %2500 = vmatprep.subr.bf16.mxu1 %v4119_v34  ;;  %v4127_v40 = vld [vmem:[%s5656_s3 + $0x220] ss:$8 sps:$4 sm:$0xff]   ;;  %v4131_v43 = vld [vmem:[%s5656_s3 + $0x234] ss:$8 sps:$4 sm:$0xff]   ;;  %v4133_v46 = vld [vmem:[%s5656_s3 + $0x230] ss:$8 sps:$4 sm:$0xff]   ;;  %v3397_v49 = vcombine.low %v61_v41, %v4629_v4 }
  0x33   :  { %v93_v44 = vld [vmem:[%s5653_s0 + $0x40] sm:$0xf]  ;;  %v4080_v45 = vld [vmem:[#allocation3 + $0x30] sm:$0xff]   ;;  %v4137_v48 = vld [vmem:[%s5656_s3 + $0x244] ss:$8 sps:$4 sm:$0xff]  }
  0x34   :  { %3900 = vmatpush3.bf16.msra.mxu0 %v4059_v3  ;;  %v3388_v47 = vcombine.low %v4734_v42, %v93_v44  ;;  %v4081_v50 = vld [vmem:[#allocation3 + $0x38] sm:$0xff]   ;;  %v4139_v51 = vld [vmem:[%s5656_s3 + $0x240] ss:$8 sps:$4 sm:$0xff]   ;;  %v4149_v56 = vld [vmem:[%s5656_s3 + $0x264] ss:$8 sps:$4 sm:$0xff]  }
  0x35   :  { %3901 = vmatprep.subr.bf16.mxu0 %v4060_v7  ;;  %2501 = vmatpush1.bf16.msra.mxu1 %v4121_v35  ;;  %v4143_v52 = vld [vmem:[%s5656_s3 + $0x254] ss:$8 sps:$4 sm:$0xff]   ;;  %v4082_v53 = vld [vmem:[#allocation3 + $0x80] sm:$0xff]   ;;  %v4145_v54 = vld [vmem:[%s5656_s3 + $0x250] ss:$8 sps:$4 sm:$0xff]  }
  0x36   :  { %2502 = vmatprep.subr.bf16.mxu1 %v4125_v38  ;;  %v4083_v58 = vld [vmem:[#allocation3 + $0x88] sm:$0xff]   ;;  %v4155_v60 = vld [vmem:[%s5656_s3 + $0x274] ss:$8 sps:$4 sm:$0xff]   ;;  %v4157_v62 = vld [vmem:[%s5656_s3 + $0x270] ss:$8 sps:$4 sm:$0xff]  }
  0x37   :  { %v4151_v59 = vld [vmem:[%s5656_s3 + $0x260] ss:$8 sps:$4 sm:$0xff]   ;;  %v4086_v61 = vld [vmem:[#allocation3 + $0x90] sm:$0xff]   ;;  %v4087_v0 = vld [vmem:[#allocation3 + $0x98] sm:$0xff]  }
  0x38   :  { %3902 = vmatpush3.bf16.msra.mxu0 %v4060_v7  ;;  %v4161_v1 = vld [vmem:[%s5656_s3 + $0x284] ss:$8 sps:$4 sm:$0xff]   ;;  %v4163_v3 = vld [vmem:[%s5656_s3 + $0x280] ss:$8 sps:$4 sm:$0xff]   ;;  %v4167_v4 = vld [vmem:[%s5656_s3 + $0x294] ss:$8 sps:$4 sm:$0xff]  }
  0x39   :  { %3903 = vmatprep.subr.bf16.mxu0 %v4061_v8  ;;  %2503 = vmatpush1.bf16.msra.mxu1 %v4127_v40  ;;  %v4090_v5 = vld [vmem:[#allocation3 + $0xa0] sm:$0xff]   ;;  %v4169_v6 = vld [vmem:[%s5656_s3 + $0x290] ss:$8 sps:$4 sm:$0xff]   ;;  %v4179_v12 = vld [vmem:[%s5656_s3 + $0x2b4] ss:$8 sps:$4 sm:$0xff]  }
  0x3a   :  { %2504 = vmatprep.subr.bf16.mxu1 %v4131_v43  ;;  %v4173_v7 = vld [vmem:[%s5656_s3 + $0x2a4] ss:$8 sps:$4 sm:$0xff]   ;;  %v4175_v11 = vld [vmem:[%s5656_s3 + $0x2a0] ss:$8 sps:$4 sm:$0xff]   ;;  %v4181_v14 = vld [vmem:[%s5656_s3 + $0x2b0] ss:$8 sps:$4 sm:$0xff]  }
  0x3b   :  { %v4096_v15 = vld [vmem:[%s5653_s0 + $0x8] sm:$0xff]   ;;  %v4097_v19 = vld [vmem:[%s5653_s0 + $0x10] sm:$0xff]   ;;  %v4098_v20 = vld [vmem:[%s5653_s0 + $0x18] sm:$0xff]  }
  0x3c   :  { %3904 = vmatpush3.bf16.msra.mxu0 %v4061_v8  ;;  %v3402_v8 = vcombine.low %v4680_v23, %v4689_v27  ;;  %v4109_v22 = vld [vmem:[%s5656_s3 + $0x14] ss:$8 sps:$4 sm:$0xff]   ;;  %v4107_v23 = vld [vmem:[%s5656_s3 + $0x10] ss:$8 sps:$4 sm:$0xff]   ;;  %v4110_v27 = vld [vmem:[%s5656_s3 + $0x20] ss:$8 sps:$4 sm:$0xff]  }
  0x3d   :  { %3905 = vmatprep.subr.bf16.mxu0 %v4062_v9  ;;  %2505 = vmatpush1.bf16.msra.mxu1 %v4133_v46  ;;  %v4124_v30 = vld [vmem:[%s5656_s3 + $0x44] ss:$8 sps:$4 sm:$0xff]   ;;  %v4101_v31 = vld [vmem:[%s5653_s0 + $0x30] sm:$0xff]   ;;  %v4134_v38 = vld [vmem:[%s5656_s3 + $0x60] ss:$8 sps:$4 sm:$0xff]  }
  0x3e   :  { %2506 = vmatprep.subr.bf16.mxu1 %v4137_v48  ;;  %v4130_v34 = vld [vmem:[%s5656_s3 + $0x54] ss:$8 sps:$4 sm:$0xff]   ;;  %v4128_v35 = vld [vmem:[%s5656_s3 + $0x50] ss:$8 sps:$4 sm:$0xff]   ;;  %v4148_v41 = vld [vmem:[%s5656_s3 + $0x84] ss:$8 sps:$4 sm:$0xff]  }
  0x3f   :  { %v4140_v40 = vld [vmem:[%s5656_s3 + $0x70] ss:$8 sps:$4 sm:$0xff]   ;;  %v4154_v43 = vld [vmem:[%s5656_s3 + $0x94] ss:$8 sps:$4 sm:$0xff]   ;;  %v4158_v46 = vld [vmem:[%s5656_s3 + $0xa0] ss:$8 sps:$4 sm:$0xff]  }
  0x40   :  { %3906 = vmatpush3.bf16.msra.mxu0 %v4062_v9  ;;  %v4091_v9 = vld [vmem:[#allocation3 + $0xa8] sm:$0xff]   ;;  %v4152_v44 = vld [vmem:[%s5656_s3 + $0x90] ss:$8 sps:$4 sm:$0xff]  }
  0x41   :  { %3907 = vmatprep.subr.bf16.mxu0 %v4063_v10  ;;  %2507 = vmatpush1.bf16.msra.mxu1 %v4139_v51  ;;  %v4164_v48 = vld [vmem:[%s5656_s3 + $0xb0] ss:$8 sps:$4 sm:$0xff]   ;;  %v4178_v51 = vld [vmem:[%s5656_s3 + $0xd4] ss:$8 sps:$4 sm:$0xff]  }
  0x42   :  { %2508 = vmatprep.subr.bf16.mxu1 %v4143_v52  ;;  %v4176_v52 = vld [vmem:[%s5656_s3 + $0xd0] ss:$8 sps:$4 sm:$0xff]  }
  0x44   :  { %3908 = vmatpush3.bf16.msra.mxu0 %v4063_v10  ;;  %v3403_v10 = vcombine.low %v4694_v28, %v4705_v32  ;;  %v4118_v28 = vld [vmem:[%s5656_s3 + $0x34] ss:$8 sps:$4 sm:$0xff]  }
  0x45   :  { %3925 = vmatprep.subr.bf16.mxu0 %v4068_v13  ;;  %2509 = vmatpush1.bf16.msra.mxu1 %v4145_v54  ;;  %v4102_v32 = vld [vmem:[%s5653_s0 + $0x38] sm:$0xff]   ;;  %v4185_v54 = vld [vmem:[%s5656_s3 + $0x2c4] ss:$8 sps:$4 sm:$0xff]  }
  0x46   :  { %2510 = vmatprep.subr.bf16.mxu1 %v4149_v56  ;;  %v4187_v56 = vld [vmem:[%s5656_s3 + $0x2c0] ss:$8 sps:$4 sm:$0xff]  }
  0x47   :  { %3910 = vmatmul.mubr.bf16.vlgmr.msra.gmra.mrb[0].mxu0 %v3382_v16  ;;  %v3404_v16 = vcombine.low %v4710_v33, %v4734_v42  ;;  %v4122_v33 = vld [vmem:[%s5656_s3 + $0x40] ss:$8 sps:$4 sm:$0xff]  }
  0x48   :  { %3926 = vmatpush3.bf16.msra.mxu0 %v4068_v13  ;;  %3913 = vmatprep.mubr.bf16.mxu0 %v3383_v17  ;;  %v4094_v13 = vld [vmem:[#allocation3 + $0xb0] sm:$0xff]   ;;  %v4095_v17 = vld [vmem:[#allocation3 + $0xb8] sm:$0xff]   ;;  %v4146_v42 = vld [vmem:[%s5656_s3 + $0x80] ss:$8 sps:$4 sm:$0xff]  }
  0x49   :  { %3927 = vmatprep.subr.bf16.mxu0 %v4069_v18  ;;  %2511 = vmatpush1.bf16.msra.mxu1 %v4151_v59  ;;  %v4188_v59 = vld [vmem:[%s5656_s3 + $0xf0] ss:$8 sps:$4 sm:$0xff]  }
  0x4a   :  { %2512 = vmatprep.subr.bf16.mxu1 %v4155_v60  ;;  %v4193_v60 = vld [vmem:[%s5656_s3 + $0x2d0] ss:$8 sps:$4 sm:$0xff]  }
  0x4c   :  { %3928 = vmatpush3.bf16.msra.mxu0 %v4069_v18  ;;  %v4106_v18 = vld [vmem:[%s5656_s3 + $0x4] ss:$8 sps:$4 sm:$0xff]  }
  0x4d   :  { %3929 = vmatprep.subr.bf16.mxu0 %v4072_v21  ;;  %2513 = vmatpush1.bf16.msra.mxu1 %v4157_v62  ;;  %v4197_v62 = vld [vmem:[%s5656_s3 + $0x2e4] ss:$8 sps:$4 sm:$0xff]  }
  0x4e   :  { %2514 = vmatprep.subr.bf16.mxu1 %v4161_v1  ;;  %v4205_v1 = vld [vmem:[%s5656_s3 + $0x2f0] ss:$8 sps:$4 sm:$0xff]  }
  0x4f   :  { %3914 = vmatmul.mubr.bf16.gmra.mrb[4].mxu0 %v3384_v24  ;;  %v4112_v24 = vld [vmem:[%s5656_s3 + $0x24] ss:$8 sps:$4 sm:$0xff]  }
  0x50   :  { %3930 = vmatpush3.bf16.msra.mxu0 %v4072_v21  ;;  %3917 = vmatprep.mubr.bf16.mxu0 %v3385_v25  ;;  %v4104_v21 = vld [vmem:[%s5656_s3] ss:$8 sps:$4 sm:$0xff]  }
  0x51   :  { %3931 = vmatprep.subr.bf16.mxu0 %v4073_v26  ;;  %2515 = vmatpush1.bf16.msra.mxu1 %v4163_v3  ;;  %v4099_v25 = vld [vmem:[%s5653_s0 + $0x20] sm:$0xff]  }
  0x52   :  { %2516 = vmatprep.subr.bf16.mxu1 %v4167_v4  ;;  %v4962_v3 = vld [vmem:[%s5655_s2] ss:$0 sm:$0xff] }
  0x54   :  { %3932 = vmatpush3.bf16.msra.mxu0 %v4073_v26  ;;  %v4100_v26 = vld [vmem:[%s5653_s0 + $0x28] sm:$0xff]  }
  0x55   :  { %3933 = vmatprep.subr.bf16.mxu0 %v4076_v29  ;;  %2517 = vmatpush1.bf16.msra.mxu1 %v4169_v6 }
  0x56   :  { %2518 = vmatprep.subr.bf16.mxu1 %v4173_v7 }
  0x57   :  { %3918 = vmatmul.mubr.bf16.gmra.mrb[8].mxu0 %v3386_v36  ;;  %v4136_v36 = vld [vmem:[%s5656_s3 + $0x64] ss:$8 sps:$4 sm:$0xff]  }
  0x58   :  { %3934 = vmatpush3.bf16.msra.mxu0 %v4076_v29  ;;  %3921 = vmatprep.mubr.bf16.mxu0 %v3387_v37  ;;  %v4116_v29 = vld [vmem:[%s5656_s3 + $0x30] ss:$8 sps:$4 sm:$0xff]   ;;  %v4103_v37 = vld [vmem:[%s5653_s0 + $0x40] sm:$0xff]  }
  0x59   :  { %3935 = vmatprep.subr.bf16.mxu0 %v4077_v39  ;;  %2519 = vmatpush1.bf16.msra.mxu1 %v4175_v11 }
  0x5a   :  { %2520 = vmatprep.subr.bf16.mxu1 %v4179_v12 }
  0x5c   :  { %3936 = vmatpush3.bf16.msra.mxu0 %v4077_v39  ;;  %v4142_v39 = vld [vmem:[%s5656_s3 + $0x74] ss:$8 sps:$4 sm:$0xff]  }
  0x5d   :  { %3937 = vmatprep.subr.bf16.mxu0 %v4080_v45  ;;  %2521 = vmatpush1.bf16.msra.mxu1 %v4181_v14 }
  0x5e   :  { %2522 = vmatprep.subr.bf16.mxu1 %v4185_v54  ;;  %v4221_v54 = vld [vmem:[%s5656_s3 + $0x320] ss:$8 sps:$4 sm:$0xff]  }
  0x5f   :  { %3922 = vmatmul.mubr.bf16.gmra.mrb[12].mxu0 %v3388_v47  ;;  %v4166_v47 = vld [vmem:[%s5656_s3 + $0xb4] ss:$8 sps:$4 sm:$0xff]  }
  0x60   :  { %3938 = vmatpush3.bf16.msra.mxu0 %v4080_v45  ;;  %3941 = vmatprep.mubr.bf16.mxu0 %v3397_v49  ;;  %v4160_v45 = vld [vmem:[%s5656_s3 + $0xa4] ss:$8 sps:$4 sm:$0xff]  }
  0x61   :  { %3939 = vmatprep.subr.bf16.mxu0 %v4081_v50  ;;  %v4172_v49 = vld [vmem:[%s5656_s3 + $0xc4] ss:$8 sps:$4 sm:$0xff]   ;;  %2523 = vmatpush1.bf16.msra.mxu1 %v4187_v56 }
  0x64   :  { %3940 = vmatpush3.bf16.msra.mxu0 %v4081_v50  ;;  %v4170_v50 = vld [vmem:[%s5656_s3 + $0xc0] ss:$8 sps:$4 sm:$0xff]  }
  0x65   :  { %3957 = vmatprep.subr.bf16.mxu0 %v4082_v53 }
  0x67   :  { %3942 = vmatmul.mubr.bf16.vlgmr.msra.gmra.mrb[0].mxu0 %v3398_v55  ;;  %v4182_v55 = vld [vmem:[%s5656_s3 + $0xe0] ss:$8 sps:$4 sm:$0xff]  }
  0x68   :  { %3958 = vmatpush3.bf16.msra.mxu0 %v4082_v53  ;;  %3945 = vmatprep.mubr.bf16.mxu0 %v3399_v57  ;;  %v4184_v53 = vld [vmem:[%s5656_s3 + $0xe4] ss:$8 sps:$4 sm:$0xff]   ;;  %v4190_v57 = vld [vmem:[%s5656_s3 + $0xf4] ss:$8 sps:$4 sm:$0xff]  }
  0x69   :  { %3959 = vmatprep.subr.bf16.mxu0 %v4083_v58 }
  0x6c   :  { %3960 = vmatpush3.bf16.msra.mxu0 %v4083_v58  ;;  %v4191_v58 = vld [vmem:[%s5656_s3 + $0x2d4] ss:$8 sps:$4 sm:$0xff]  }
  0x6d   :  { %3961 = vmatprep.subr.bf16.mxu0 %v4086_v61  ;;  %2524 = vmatprep.subr.bf16.mxu1 %v4191_v58  ;;  %v4229_v58 = vld [vmem:[%s5656_s3 + $0x334] ss:$8 sps:$4 sm:$0xff]  }
  0x6e   :  { %2525 = vmatpush1.bf16.msra.mxu1 %v4193_v60 }
  0x6f   :  { %3946 = vmatmul.mubr.bf16.gmra.mrb[4].mxu0 %v3400_v63  ;;  %2526 = vmatprep.subr.bf16.mxu1 %v4197_v62  ;;  %v4199_v63 = vld [vmem:[%s5656_s3 + $0x2e0] ss:$8 sps:$4 sm:$0xff]  }
  0x70   :  { %3962 = vmatpush3.bf16.msra.mxu0 %v4086_v61  ;;  %3949 = vmatprep.mubr.bf16.mxu0 %v3401_v2  ;;  %v4196_v61 = vld [vmem:[%s5656_s3 + $0x104] ss:$8 sps:$4 sm:$0xff]  }
  0x71   :  { %3963 = vmatprep.subr.bf16.mxu0 %v4087_v0  ;;  %v4211_v2 = vld [vmem:[%s5656_s3 + $0x304] ss:$8 sps:$4 sm:$0xff]  }
  0x72   :  { %2527 = vmatpush1.bf16.msra.mxu1 %v4199_v63 }
  0x74   :  { %3964 = vmatpush3.bf16.msra.mxu0 %v4087_v0  ;;  %v4203_v0 = vld [vmem:[%s5656_s3 + $0x2f4] ss:$8 sps:$4 sm:$0xff]  }
  0x75   :  { %3965 = vmatprep.subr.bf16.mxu0 %v4090_v5  ;;  %2528 = vmatprep.subr.bf16.mxu1 %v4203_v0  ;;  %v4224_v0 = vld [vmem:[%s5656_s3 + $0x150] ss:$8 sps:$4 sm:$0xff]  }
  0x76   :  { %2529 = vmatpush1.bf16.msra.mxu1 %v4205_v1  ;;  %v4227_v1 = vld [vmem:[%s5656_s3 + $0x330] ss:$8 sps:$4 sm:$0xff]  }
  0x77   :  { %3950 = vmatmul.mubr.bf16.gmra.mrb[8].mxu0 %v3402_v8  ;;  %2539 = vmatprep.subr.bf16.mxu1 %v4211_v2  ;;  %v4232_v2 = vld [vmem:[%s5656_s3 + $0x164] ss:$8 sps:$4 sm:$0xff]  }
  0x78   :  { %3966 = vmatpush3.bf16.msra.mxu0 %v4090_v5  ;;  %3953 = vmatprep.mubr.bf16.mxu0 %v3403_v10 }
  0x79   :  { %3967 = vmatprep.subr.bf16.mxu0 %v4091_v9 }
  0x7c   :  { %3968 = vmatpush3.bf16.msra.mxu0 %v4091_v9 }
  0x7d   :  { %3969 = vmatprep.subr.bf16.mxu0 %v4094_v13 }
  0x7f   :  { %3954 = vmatmul.mubr.bf16.gmra.mrb[12].mxu0 %v3404_v16 }
  0x80   :  { %3970 = vmatpush3.bf16.msra.mxu0 %v4094_v13  ;;  %3973 = vmatprep.mubr.bf16.mxu0 %v4096_v15 }
  0x81   :  { %3971 = vmatprep.subr.bf16.mxu0 %v4095_v17 }
  0x84   :  { %3972 = vmatpush3.bf16.msra.mxu0 %v4095_v17  ;;  %v4194_v17 = vld [vmem:[%s5656_s3 + $0x100] ss:$8 sps:$4 sm:$0xff]  }
  0x85   :  { %2416 = vmatprep.subr.bf16.mxu0 %v4106_v18 }
  0x87   :  { %3974 = vmatmul.mubr.bf16.vlgmr.msra.gmra.mrb[0].mxu0 %v4097_v19 }
  0x88   :  { %3977 = vmatprep.mubr.bf16.mxu0 %v4098_v20  ;;  %2417 = vmatpush1.bf16.msra.mxu0 %v4104_v21  ;;  %v4202_v21 = vld [vmem:[%s5656_s3 + $0x114] ss:$8 sps:$4 sm:$0xff]  }
  0x89   :  { %2418 = vmatprep.subr.bf16.mxu0 %v4109_v22 }
  0x8c   :  { %2419 = vmatpush1.bf16.msra.mxu0 %v4107_v23 }
  0x8d   :  { %2420 = vmatprep.subr.bf16.mxu0 %v4112_v24 }
  0x8f   :  { %3978 = vmatmul.mubr.bf16.gmra.mrb[4].mxu0 %v4099_v25 }
  0x90   :  { %3981 = vmatprep.mubr.bf16.mxu0 %v4100_v26  ;;  %2421 = vmatpush1.bf16.msra.mxu0 %v4110_v27 }
  0x91   :  { %2422 = vmatprep.subr.bf16.mxu0 %v4118_v28  ;;  %v4200_v28 = vld [vmem:[%s5656_s3 + $0x110] ss:$8 sps:$4 sm:$0xff]  }
  0x94   :  { %2423 = vmatpush1.bf16.msra.mxu0 %v4116_v29 }
  0x95   :  { %2424 = vmatprep.subr.bf16.mxu0 %v4124_v30  ;;  %v4208_v30 = vld [vmem:[%s5656_s3 + $0x124] ss:$8 sps:$4 sm:$0xff]  }
  0x97   :  { %3982 = vmatmul.mubr.bf16.gmra.mrb[8].mxu0 %v4101_v31 }
  0x98   :  { %3985 = vmatprep.mubr.bf16.mxu0 %v4102_v32  ;;  %2425 = vmatpush1.bf16.msra.mxu0 %v4122_v33 }
  0x99   :  { %2426 = vmatprep.subr.bf16.mxu0 %v4130_v34  ;;  %v4206_v34 = vld [vmem:[%s5656_s3 + $0x120] ss:$8 sps:$4 sm:$0xff]  }
  0x9c   :  { %2427 = vmatpush1.bf16.msra.mxu0 %v4128_v35 }
  0x9d   :  { %2428 = vmatprep.subr.bf16.mxu0 %v4136_v36  ;;  %v4209_v36 = vld [vmem:[%s5656_s3 + $0x300] ss:$8 sps:$4 sm:$0xff]  }
  0x9f   :  { %3986 = vmatmul.mubr.bf16.gmra.mrb[12].mxu0 %v4103_v37 }
  0xa0   :  { %2429 = vmatpush1.bf16.msra.mxu0 %v4134_v38 }
  0xa1   :  { %2430 = vmatprep.subr.bf16.mxu0 %v4142_v39 }
  0xa4   :  { %2431 = vmatpush1.bf16.msra.mxu0 %v4140_v40  ;;  %v4214_v40 = vld [vmem:[%s5656_s3 + $0x134] ss:$8 sps:$4 sm:$0xff]  }
  0xa5   :  { %2432 = vmatprep.subr.bf16.mxu0 %v4148_v41 }
  0xa8   :  { %2433 = vmatpush1.bf16.msra.mxu0 %v4146_v42 }
  0xa9   :  { %2434 = vmatprep.subr.bf16.mxu0 %v4154_v43  ;;  %v4217_v43 = vld [vmem:[%s5656_s3 + $0x314] ss:$8 sps:$4 sm:$0xff]  }
  0xac   :  { %2435 = vmatpush1.bf16.msra.mxu0 %v4152_v44 }
  0xad   :  { %2436 = vmatprep.subr.bf16.mxu0 %v4160_v45 }
  0xb0   :  { %2437 = vmatpush1.bf16.msra.mxu0 %v4158_v46 }
  0xb1   :  { %2438 = vmatprep.subr.bf16.mxu0 %v4166_v47 }
  0xb4   :  { %2439 = vmatpush1.bf16.msra.mxu0 %v4164_v48  ;;  %v4212_v48 = vld [vmem:[%s5656_s3 + $0x130] ss:$8 sps:$4 sm:$0xff]  }
  0xb5   :  { %2440 = vmatprep.subr.bf16.mxu0 %v4172_v49  ;;  %v4215_v49 = vld [vmem:[%s5656_s3 + $0x310] ss:$8 sps:$4 sm:$0xff]  }
  0xb8   :  { %2441 = vmatpush1.bf16.msra.mxu0 %v4170_v50  ;;  %v4220_v50 = vld [vmem:[%s5656_s3 + $0x144] ss:$8 sps:$4 sm:$0xff]  }
  0xb9   :  { %2442 = vmatprep.subr.bf16.mxu0 %v4178_v51  ;;  %v4223_v51 = vld [vmem:[%s5656_s3 + $0x324] ss:$8 sps:$4 sm:$0xff]  }
  0xbc   :  { %2443 = vmatpush1.bf16.msra.mxu0 %v4176_v52 }
  0xbd   :  { %2444 = vmatprep.subr.bf16.mxu0 %v4184_v53  ;;  %v4218_v53 = vld [vmem:[%s5656_s3 + $0x140] ss:$8 sps:$4 sm:$0xff]  }
  0xc0   :  { %2445 = vmatpush1.bf16.msra.mxu0 %v4182_v55 }
  0xc1   :  { %2446 = vmatprep.subr.bf16.mxu0 %v4190_v57  ;;  %v4226_v57 = vld [vmem:[%s5656_s3 + $0x154] ss:$8 sps:$4 sm:$0xff]  }
  0xc4   :  { %2447 = vmatpush1.bf16.msra.mxu0 %v4188_v59 }
  0xc5   :  { %2457 = vmatprep.subr.bf16.mxu0 %v4196_v61 }
 0x15a   :  { %v3975_v4 = vpop.f32.mrb[0].mxu0 }
 0x15b   :  { %v4965_v5 = vadd.f32 %v3975_v4, %v4962_v3  ;;  %v630_v6 = vpop.f32.mrb[1].mxu0  ;;  %v4230_v4 = vld [vmem:[%s5656_s3 + $0x160] ss:$8 sps:$4 sm:$0xff]  }
 0x15c   :  { %v716_v7 = vadd.f32 %v4962_v3, %v630_v6  ;;  %v3976_v8 = vpop.f32.mrb[2].mxu0  ;;  %v4233_v6 = vld [vmem:[%s5656_s3 + $0x340] ss:$8 sps:$4 sm:$0xff]  }
 0x15d   :  { %v719_v9 = vadd.f32 %v3976_v8, %v4962_v3  ;;  %v633_v10 = vpop.f32.mrb[3].mxu0  ;;  %v4241_v8 = vld [vmem:[%s5656_s3 + $0x354] ss:$8 sps:$4 sm:$0xff]  }
 0x15e   :  { %v717_v11 = vadd.f32 %v4962_v3, %v633_v10  ;;  %v732_v12 = vmax.f32 %v716_v7, 0.0  ;;  %v4238_v7 = vld [vmem:[%s5656_s3 + $0x174] ss:$8 sps:$4 sm:$0xff]   ;;  %v4239_v10 = vld [vmem:[%s5656_s3 + $0x350] ss:$8 sps:$4 sm:$0xff]  }
 0x15f   :  { %v735_v13 = vmax.f32 %v719_v9, 0.0  ;;  %v4236_v9 = vld [vmem:[%s5656_s3 + $0x170] ss:$8 sps:$4 sm:$0xff]  }
 0x160   :  { %v733_v14 = vmax.f32 %v717_v11, 0.0  ;;  %v3829_v18 = vpack.c.bf16 %v732_v12, %v732_v12  ;;  %v4244_v11 = vld [vmem:[%s5656_s3 + $0x184] ss:$8 sps:$4 sm:$0xff]  }
 0x161   :  { %v3832_v22 = vpack.c.bf16 %v735_v13, %v735_v13  ;;  %v4247_v12 = vld [vmem:[%s5656_s3 + $0x364] ss:$8 sps:$4 sm:$0xff]   ;;  %v4242_v13 = vld [vmem:[%s5656_s3 + $0x180] ss:$8 sps:$4 sm:$0xff]  }
 0x162   :  { %v3830_v15 = vpack.c.bf16 %v733_v14, %v733_v14  ;;  %v3979_v16 = vpop.f32.mrb[4].mxu0  ;;  %v4245_v14 = vld [vmem:[%s5656_s3 + $0x360] ss:$8 sps:$4 sm:$0xff]  }
 0x163   :  { %v4974_v19 = vadd.f32 %v3979_v16, %v4962_v3  ;;  %v646_v20 = vpop.f32.mrb[5].mxu0  ;;  %v4253_v16 = vld [vmem:[%s5656_s3 + $0x374] ss:$8 sps:$4 sm:$0xff]  }
 0x164   :  { %v720_v23 = vadd.f32 %v4962_v3, %v646_v20  ;;  %v3980_v24 = vpop.f32.mrb[6].mxu0  ;;  %2448 = vmatprep.mubr.bf16.mxu0 %v3830_v15  ;;  %v4250_v15 = vld [vmem:[%s5656_s3 + $0x194] ss:$8 sps:$4 sm:$0xff]   ;;  %v4256_v20 = vld [vmem:[%s5656_s3 + $0x1a4] ss:$8 sps:$4 sm:$0xff]  }
 0x165   :  { %v723_v25 = vadd.f32 %v3980_v24, %v4962_v3  ;;  %v649_v26 = vpop.f32.mrb[7].mxu0  ;;  %2449 = vmatmul.mubr.bf16.vlgmr.msra.gmra.mrb[16].mxu0 %v3829_v18  ;;  %v4251_v18 = vld [vmem:[%s5656_s3 + $0x370] ss:$8 sps:$4 sm:$0xff]   ;;  %v4262_v24 = vld [vmem:[%s5656_s3 + $0x1b4] ss:$8 sps:$4 sm:$0xff]  }
 0x166   :  { %v721_v27 = vadd.f32 %v4962_v3, %v649_v26  ;;  %2458 = vmatpush1.bf16.msra.mxu0 %v4194_v17  ;;  %2489 = vmatprep.mubr.bf16.mxu0 %v3832_v22  ;;  %v736_v29 = vmax.f32 %v720_v23, 0.0  ;;  %v4248_v17 = vld [vmem:[%s5656_s3 + $0x190] ss:$8 sps:$4 sm:$0xff]   ;;  %v4254_v22 = vld [vmem:[%s5656_s3 + $0x1a0] ss:$8 sps:$4 sm:$0xff]  }
 0x167   :  { %2459 = vmatprep.subr.bf16.mxu0 %v4202_v21  ;;  %v739_v32 = vmax.f32 %v723_v25, 0.0  ;;  %v4259_v21 = vld [vmem:[%s5656_s3 + $0x384] ss:$8 sps:$4 sm:$0xff]   ;;  %v4257_v23 = vld [vmem:[%s5656_s3 + $0x380] ss:$8 sps:$4 sm:$0xff]  }
 0x168   :  { %v737_v31 = vmax.f32 %v721_v27, 0.0  ;;  %v3833_v37 = vpack.c.bf16 %v736_v29, %v736_v29  ;;  %v4265_v25 = vld [vmem:[%s5656_s3 + $0x394] ss:$8 sps:$4 sm:$0xff]   ;;  %v4260_v26 = vld [vmem:[%s5656_s3 + $0x1b0] ss:$8 sps:$4 sm:$0xff]  }
 0x169   :  { %v3836_v44 = vpack.c.bf16 %v739_v32, %v739_v32  ;;  %v4263_v27 = vld [vmem:[%s5656_s3 + $0x390] ss:$8 sps:$4 sm:$0xff]   ;;  %v4271_v29 = vld [vmem:[%s5656_s3 + $0x3a4] ss:$8 sps:$4 sm:$0xff]   ;;  %v4274_v32 = vld [vmem:[%s5656_s3 + $0x1d4] ss:$8 sps:$4 sm:$0xff]  }
 0x16a   :  { %2460 = vmatpush1.bf16.msra.mxu0 %v4200_v28  ;;  %v3983_v33 = vpop.f32.mrb[8].mxu0  ;;  %v3834_v35 = vpack.c.bf16 %v737_v31, %v737_v31  ;;  %v4268_v28 = vld [vmem:[%s5656_s3 + $0x1c4] ss:$8 sps:$4 sm:$0xff]   ;;  %v4269_v31 = vld [vmem:[%s5656_s3 + $0x3a0] ss:$8 sps:$4 sm:$0xff]  }
 0x16b   :  { %v4995_v38 = vadd.f32 %v3983_v33, %v4962_v3  ;;  %v662_v39 = vpop.f32.mrb[9].mxu0  ;;  %2461 = vmatprep.subr.bf16.mxu0 %v4208_v30  ;;  %v4266_v30 = vld [vmem:[%s5656_s3 + $0x1c0] ss:$8 sps:$4 sm:$0xff]   ;;  %v4277_v33 = vld [vmem:[%s5656_s3 + $0x3b4] ss:$8 sps:$4 sm:$0xff]  }
 0x16c   :  { %v5001_v41 = vadd.f32 %v4962_v3, %v662_v39  ;;  %v3984_v42 = vpop.f32.mrb[10].mxu0  ;;  %2530 = vmatprep.mubr.bf16.mxu1 %v3834_v35  ;;  %v4275_v35 = vld [vmem:[%s5656_s3 + $0x3b0] ss:$8 sps:$4 sm:$0xff]   ;;  %v4278_v39 = vld [vmem:[%s5656_s3 + $0x1e0] ss:$8 sps:$4 sm:$0xff]  }
 0x16d   :  { %v5007_v45 = vadd.f32 %v3984_v42, %v4962_v3  ;;  %v665_v46 = vpop.f32.mrb[11].mxu0  ;;  %2531 = vmatmul.mubr.bf16.vlgmr.msra.gmra.mrb[0].mxu1 %v3833_v37  ;;  %v4283_v37 = vld [vmem:[%s5656_s3 + $0x3c4] ss:$8 sps:$4 sm:$0xff]   ;;  %v4286_v42 = vld [vmem:[%s5656_s3 + $0x1f4] ss:$8 sps:$4 sm:$0xff]  }
 0x16e   :  { %v5010_v47 = vadd.f32 %v4962_v3, %v665_v46  ;;  %2462 = vmatpush1.bf16.msra.mxu0 %v4206_v34  ;;  %2540 = vmatpush1.bf16.msra.mxu1 %v4209_v36  ;;  %v4272_v34 = vld [vmem:[%s5656_s3 + $0x1d0] ss:$8 sps:$4 sm:$0xff]   ;;  %v4280_v36 = vld [vmem:[%s5656_s3 + $0x1e4] ss:$8 sps:$4 sm:$0xff]  }
 0x16f   :  { %2571 = vmatprep.mubr.bf16.mxu1 %v3836_v44  ;;  %2463 = vmatprep.subr.bf16.mxu0 %v4214_v40  ;;  %v4281_v40 = vld [vmem:[%s5656_s3 + $0x3c0] ss:$8 sps:$4 sm:$0xff]   ;;  %v4284_v44 = vld [vmem:[%s5656_s3 + $0x1f0] ss:$8 sps:$4 sm:$0xff]  }
 0x170   :  { %2541 = vmatprep.subr.bf16.mxu1 %v4217_v43  ;;  %v4289_v43 = vld [vmem:[%s5656_s3 + $0x3d4] ss:$8 sps:$4 sm:$0xff]   ;;  %v4287_v46 = vld [vmem:[%s5656_s3 + $0x3d0] ss:$8 sps:$4 sm:$0xff]  }
 0x172   :  { %2464 = vmatpush1.bf16.msra.mxu0 %v4212_v48  ;;  %2542 = vmatpush1.bf16.msra.mxu1 %v4215_v49  ;;  %v3987_v52 = vpop.f32.mrb[12].mxu0  ;;  %v734_v48 = vmax.f32 %v4965_v5, 0.0  ;;  %v4292_v49 = vld [vmem:[%s5656_s3 + $0x3e4] ss:$8 sps:$4 sm:$0xff]   ;;  %v4293_v5 = vld [vmem:[%s5656_s3 + $0x3f0] ss:$8 sps:$4 sm:$0xff]  }
 0x173   :  { %v5031_v55 = vadd.f32 %v3987_v52, %v4962_v3  ;;  %v678_v56 = vpop.f32.mrb[13].mxu0  ;;  %2465 = vmatprep.subr.bf16.mxu0 %v4220_v50  ;;  %2543 = vmatprep.subr.bf16.mxu1 %v4223_v51  ;;  %v4290_v50 = vld [vmem:[%s5656_s3 + $0x3e0] ss:$8 sps:$4 sm:$0xff]   ;;  %v4295_v52 = vld [vmem:[%s5656_s3 + $0x3f4] ss:$8 sps:$4 sm:$0xff]  }
 0x174   :  { %v5040_v59 = vadd.f32 %v4962_v3, %v678_v56  ;;  %v3988_v60 = vpop.f32.mrb[14].mxu0  ;;  %v3831_v51 = vpack.c.bf16 %v734_v48, %v734_v48  ;;  %v741_v56 = vmax.f32 %v5010_v47, 0.0  ;;  %v4304_v47 = vld [vmem:[%s5656_s3 + $0x424] ss:$8 sps:$4 sm:$0xff]   ;;  %v4362_v48 = vld [vmem:[%s5656_s3 + $0x560] ss:$8 sps:$4 sm:$0xff]  }
 0x175   :  { %v5043_v61 = vadd.f32 %v3988_v60, %v4962_v3  ;;  %v681_v62 = vpop.f32.mrb[15].mxu0  ;;  %v4301_v60 = vld [vmem:[%s5656_s3 + $0x414] ss:$8 sps:$4 sm:$0xff]  }
 0x176   :  { %v5046_v63 = vadd.f32 %v4962_v3, %v681_v62  ;;  %2466 = vmatpush1.bf16.msra.mxu0 %v4218_v53  ;;  %2544 = vmatpush1.bf16.msra.mxu1 %v4221_v54  ;;  %v4235_v3 = vld [vmem:[%s5656_s3 + $0x344] ss:$8 sps:$4 sm:$0xff]   ;;  %v738_v53 = vmax.f32 %v4974_v19, 0.0  ;;  %v3838_v62 = vpack.c.bf16 %v741_v56, %v741_v56  ;;  %v4299_v19 = vld [vmem:[%s5656_s3 + $0x410] ss:$8 sps:$4 sm:$0xff]  }
 0x177   :  { %2467 = vmatprep.subr.bf16.mxu0 %v4226_v57  ;;  %2545 = vmatprep.subr.bf16.mxu1 %v4229_v58  ;;  %v4298_v54 = vld [vmem:[%s5656_s3 + $0x404] ss:$8 sps:$4 sm:$0xff]   ;;  %v4296_v57 = vld [vmem:[%s5656_s3 + $0x400] ss:$8 sps:$4 sm:$0xff]  }
 0x178   :  { %v3835_v58 = vpack.c.bf16 %v738_v53, %v738_v53  ;;  %v4371_v53 = vld [vmem:[%s5656_s3 + $0x590] ss:$8 sps:$4 sm:$0xff]   ;;  %v4374_v56 = vld [vmem:[%s5656_s3 + $0x5a0] ss:$8 sps:$4 sm:$0xff]  }
 0x17a   :  { %2468 = vmatpush1.bf16.msra.mxu0 %v4224_v0  ;;  %2546 = vmatpush1.bf16.msra.mxu1 %v4227_v1  ;;  %v4302_v0 = vld [vmem:[%s5656_s3 + $0x420] ss:$8 sps:$4 sm:$0xff]   ;;  %v4307_v1 = vld [vmem:[%s5656_s3 + $0x434] ss:$8 sps:$4 sm:$0xff]  }
 0x17b   :  { %2469 = vmatprep.subr.bf16.mxu0 %v4232_v2  ;;  %2547 = vmatprep.subr.bf16.mxu1 %v4235_v3  ;;  %v4305_v2 = vld [vmem:[%s5656_s3 + $0x430] ss:$8 sps:$4 sm:$0xff]   ;;  %v4310_v3 = vld [vmem:[%s5656_s3 + $0x444] ss:$8 sps:$4 sm:$0xff]  }
 0x17e   :  { %2470 = vmatpush1.bf16.msra.mxu0 %v4230_v4  ;;  %2548 = vmatpush1.bf16.msra.mxu1 %v4233_v6  ;;  %v4308_v4 = vld [vmem:[%s5656_s3 + $0x440] ss:$8 sps:$4 sm:$0xff]   ;;  %v4313_v6 = vld [vmem:[%s5656_s3 + $0x454] ss:$8 sps:$4 sm:$0xff]  }
 0x17f   :  { %2471 = vmatprep.subr.bf16.mxu0 %v4238_v7  ;;  %2549 = vmatprep.subr.bf16.mxu1 %v4241_v8  ;;  %v4311_v7 = vld [vmem:[%s5656_s3 + $0x450] ss:$8 sps:$4 sm:$0xff]   ;;  %v4316_v8 = vld [vmem:[%s5656_s3 + $0x464] ss:$8 sps:$4 sm:$0xff]  }
 0x182   :  { %2472 = vmatpush1.bf16.msra.mxu0 %v4236_v9  ;;  %2550 = vmatpush1.bf16.msra.mxu1 %v4239_v10  ;;  %v4314_v9 = vld [vmem:[%s5656_s3 + $0x460] ss:$8 sps:$4 sm:$0xff]   ;;  %v4319_v10 = vld [vmem:[%s5656_s3 + $0x474] ss:$8 sps:$4 sm:$0xff]  }
 0x183   :  { %2473 = vmatprep.subr.bf16.mxu0 %v4244_v11  ;;  %2551 = vmatprep.subr.bf16.mxu1 %v4247_v12  ;;  %v4317_v11 = vld [vmem:[%s5656_s3 + $0x470] ss:$8 sps:$4 sm:$0xff]   ;;  %v4322_v12 = vld [vmem:[%s5656_s3 + $0x484] ss:$8 sps:$4 sm:$0xff]  }
 0x186   :  { %2474 = vmatpush1.bf16.msra.mxu0 %v4242_v13  ;;  %2552 = vmatpush1.bf16.msra.mxu1 %v4245_v14  ;;  %v4320_v13 = vld [vmem:[%s5656_s3 + $0x480] ss:$8 sps:$4 sm:$0xff]   ;;  %v4325_v14 = vld [vmem:[%s5656_s3 + $0x494] ss:$8 sps:$4 sm:$0xff]  }
 0x187   :  { %2475 = vmatprep.subr.bf16.mxu0 %v4250_v15  ;;  %2553 = vmatprep.subr.bf16.mxu1 %v4253_v16  ;;  %v4323_v15 = vld [vmem:[%s5656_s3 + $0x490] ss:$8 sps:$4 sm:$0xff]   ;;  %v4328_v16 = vld [vmem:[%s5656_s3 + $0x4a4] ss:$8 sps:$4 sm:$0xff]  }
 0x18a   :  { %2476 = vmatpush1.bf16.msra.mxu0 %v4248_v17  ;;  %2554 = vmatpush1.bf16.msra.mxu1 %v4251_v18  ;;  %v4326_v17 = vld [vmem:[%s5656_s3 + $0x4a0] ss:$8 sps:$4 sm:$0xff]   ;;  %v4331_v18 = vld [vmem:[%s5656_s3 + $0x4b4] ss:$8 sps:$4 sm:$0xff]  }
 0x18b   :  { %2477 = vmatprep.subr.bf16.mxu0 %v4256_v20  ;;  %2555 = vmatprep.subr.bf16.mxu1 %v4259_v21  ;;  %v4329_v20 = vld [vmem:[%s5656_s3 + $0x4b0] ss:$8 sps:$4 sm:$0xff]   ;;  %v4334_v21 = vld [vmem:[%s5656_s3 + $0x4c4] ss:$8 sps:$4 sm:$0xff]  }
 0x18e   :  { %2478 = vmatpush1.bf16.msra.mxu0 %v4254_v22  ;;  %2556 = vmatpush1.bf16.msra.mxu1 %v4257_v23  ;;  %v4332_v22 = vld [vmem:[%s5656_s3 + $0x4c0] ss:$8 sps:$4 sm:$0xff]   ;;  %v4337_v23 = vld [vmem:[%s5656_s3 + $0x4d4] ss:$8 sps:$4 sm:$0xff]  }
 0x18f   :  { %2479 = vmatprep.subr.bf16.mxu0 %v4262_v24  ;;  %2557 = vmatprep.subr.bf16.mxu1 %v4265_v25  ;;  %v4335_v24 = vld [vmem:[%s5656_s3 + $0x4d0] ss:$8 sps:$4 sm:$0xff]   ;;  %v4340_v25 = vld [vmem:[%s5656_s3 + $0x4e4] ss:$8 sps:$4 sm:$0xff]  }
 0x192   :  { %2480 = vmatpush1.bf16.msra.mxu0 %v4260_v26  ;;  %2558 = vmatpush1.bf16.msra.mxu1 %v4263_v27  ;;  %v4338_v26 = vld [vmem:[%s5656_s3 + $0x4e0] ss:$8 sps:$4 sm:$0xff]   ;;  %v4343_v27 = vld [vmem:[%s5656_s3 + $0x4f4] ss:$8 sps:$4 sm:$0xff]  }
 0x193   :  { %2481 = vmatprep.subr.bf16.mxu0 %v4268_v28  ;;  %2559 = vmatprep.subr.bf16.mxu1 %v4271_v29  ;;  %v4341_v28 = vld [vmem:[%s5656_s3 + $0x4f0] ss:$8 sps:$4 sm:$0xff]   ;;  %v740_v29 = vmax.f32 %v5001_v41, 0.0 }
 0x194   :  { %v4347_v41 = vld [vmem:[%s5656_s3 + $0x510] ss:$8 sps:$4 sm:$0xff]  }
 0x196   :  { %2482 = vmatpush1.bf16.msra.mxu0 %v4266_v30  ;;  %2560 = vmatpush1.bf16.msra.mxu1 %v4269_v31  ;;  %v4346_v30 = vld [vmem:[%s5656_s3 + $0x504] ss:$8 sps:$4 sm:$0xff]   ;;  %v743_v31 = vmax.f32 %v5007_v45, 0.0 }
 0x197   :  { %2483 = vmatprep.subr.bf16.mxu0 %v4274_v32  ;;  %2561 = vmatprep.subr.bf16.mxu1 %v4277_v33  ;;  %v4344_v32 = vld [vmem:[%s5656_s3 + $0x500] ss:$8 sps:$4 sm:$0xff]   ;;  %v3837_v33 = vpack.c.bf16 %v740_v29, %v740_v29  ;;  %v4352_v45 = vld [vmem:[%s5656_s3 + $0x524] ss:$8 sps:$4 sm:$0xff]  }
 0x198   :  { %v4422_v29 = vld [vmem:[%s5656_s3 + $0x6a0] ss:$8 sps:$4 sm:$0xff]  }
 0x19a   :  { %2484 = vmatpush1.bf16.msra.mxu0 %v4272_v34  ;;  %2562 = vmatpush1.bf16.msra.mxu1 %v4275_v35  ;;  %v4349_v34 = vld [vmem:[%s5656_s3 + $0x514] ss:$8 sps:$4 sm:$0xff]   ;;  %v3840_v35 = vpack.c.bf16 %v743_v31, %v743_v31  ;;  %v4425_v31 = vld [vmem:[%s5656_s3 + $0x6b0] ss:$8 sps:$4 sm:$0xff]  }
 0x19b   :  { %2485 = vmatprep.subr.bf16.mxu0 %v4280_v36  ;;  %2563 = vmatprep.subr.bf16.mxu1 %v4283_v37  ;;  %v4350_v36 = vld [vmem:[%s5656_s3 + $0x520] ss:$8 sps:$4 sm:$0xff]   ;;  %v4355_v37 = vld [vmem:[%s5656_s3 + $0x534] ss:$8 sps:$4 sm:$0xff]  }
 0x19e   :  { %2486 = vmatpush1.bf16.msra.mxu0 %v4278_v39  ;;  %2564 = vmatpush1.bf16.msra.mxu1 %v4281_v40  ;;  %v4353_v39 = vld [vmem:[%s5656_s3 + $0x530] ss:$8 sps:$4 sm:$0xff]   ;;  %v4358_v40 = vld [vmem:[%s5656_s3 + $0x544] ss:$8 sps:$4 sm:$0xff]  }
 0x19f   :  { %2487 = vmatprep.subr.bf16.mxu0 %v4286_v42  ;;  %2565 = vmatprep.subr.bf16.mxu1 %v4289_v43  ;;  %v4356_v42 = vld [vmem:[%s5656_s3 + $0x540] ss:$8 sps:$4 sm:$0xff]   ;;  %v4361_v43 = vld [vmem:[%s5656_s3 + $0x554] ss:$8 sps:$4 sm:$0xff]  }
 0x1a2   :  { %2488 = vmatpush1.bf16.msra.mxu0 %v4284_v44  ;;  %2566 = vmatpush1.bf16.msra.mxu1 %v4287_v46  ;;  %v4359_v44 = vld [vmem:[%s5656_s3 + $0x550] ss:$8 sps:$4 sm:$0xff]   ;;  %v4364_v46 = vld [vmem:[%s5656_s3 + $0x564] ss:$8 sps:$4 sm:$0xff]  }
 0x1a3   :  { %2567 = vmatprep.subr.bf16.mxu1 %v4292_v49  ;;  %v4367_v49 = vld [vmem:[%s5656_s3 + $0x574] ss:$8 sps:$4 sm:$0xff]  }
 0x1a5   :  { %2490 = vmatmul.mubr.bf16.vlgmr.msra.gmra.mrb[16].mxu0 %v3831_v51  ;;  %v4370_v51 = vld [vmem:[%s5656_s3 + $0x584] ss:$8 sps:$4 sm:$0xff]  }
 0x1a6   :  { %2568 = vmatpush1.bf16.msra.mxu1 %v4290_v50  ;;  %v4365_v50 = vld [vmem:[%s5656_s3 + $0x570] ss:$8 sps:$4 sm:$0xff]  }
 0x1a7   :  { %2569 = vmatprep.subr.bf16.mxu1 %v4295_v52  ;;  %v4368_v52 = vld [vmem:[%s5656_s3 + $0x580] ss:$8 sps:$4 sm:$0xff]  }
 0x1aa   :  { %2570 = vmatpush1.bf16.msra.mxu1 %v4293_v5  ;;  %v4373_v5 = vld [vmem:[%s5656_s3 + $0x594] ss:$8 sps:$4 sm:$0xff]  }
 0x1ab   :  { %2580 = vmatprep.subr.bf16.mxu1 %v4298_v54  ;;  %v4376_v54 = vld [vmem:[%s5656_s3 + $0x5a4] ss:$8 sps:$4 sm:$0xff]  }
 0x1ad   :  { %2572 = vmatmul.mubr.bf16.vlgmr.msra.gmra.mrb[0].mxu1 %v3835_v58  ;;  %v4377_v58 = vld [vmem:[%s5656_s3 + $0x5b0] ss:$8 sps:$4 sm:$0xff]  }
 0x1ae   :  { %2581 = vmatpush1.bf16.msra.mxu1 %v4296_v57  ;;  %2612 = vmatprep.mubr.bf16.mxu1 %v3838_v62  ;;  %v4379_v57 = vld [vmem:[%s5656_s3 + $0x5b4] ss:$8 sps:$4 sm:$0xff]   ;;  %v4380_v62 = vld [vmem:[%s5656_s3 + $0x5c0] ss:$8 sps:$4 sm:$0xff]  }
 0x1af   :  { %2582 = vmatprep.subr.bf16.mxu1 %v4301_v60  ;;  %v4382_v60 = vld [vmem:[%s5656_s3 + $0x5c4] ss:$8 sps:$4 sm:$0xff]  }
 0x1b2   :  { %2583 = vmatpush1.bf16.msra.mxu1 %v4299_v19  ;;  %v4385_v19 = vld [vmem:[%s5656_s3 + $0x5d4] ss:$8 sps:$4 sm:$0xff]  }
 0x1b3   :  { %2584 = vmatprep.subr.bf16.mxu1 %v4304_v47  ;;  %v4383_v47 = vld [vmem:[%s5656_s3 + $0x5d0] ss:$8 sps:$4 sm:$0xff]  }
 0x1b6   :  { %2585 = vmatpush1.bf16.msra.mxu1 %v4302_v0  ;;  %v4388_v0 = vld [vmem:[%s5656_s3 + $0x5e4] ss:$8 sps:$4 sm:$0xff]  }
 0x1b7   :  { %2586 = vmatprep.subr.bf16.mxu1 %v4307_v1  ;;  %v4386_v1 = vld [vmem:[%s5656_s3 + $0x5e0] ss:$8 sps:$4 sm:$0xff]  }
 0x1ba   :  { %2587 = vmatpush1.bf16.msra.mxu1 %v4305_v2  ;;  %v4391_v2 = vld [vmem:[%s5656_s3 + $0x5f4] ss:$8 sps:$4 sm:$0xff]  }
 0x1bb   :  { %2588 = vmatprep.subr.bf16.mxu1 %v4310_v3  ;;  %v4389_v3 = vld [vmem:[%s5656_s3 + $0x5f0] ss:$8 sps:$4 sm:$0xff]  }
 0x1be   :  { %2589 = vmatpush1.bf16.msra.mxu1 %v4308_v4  ;;  %v742_v4 = vmax.f32 %v4995_v38, 0.0  ;;  %v4395_v38 = vld [vmem:[%s5656_s3 + $0x610] ss:$8 sps:$4 sm:$0xff]  }
 0x1bf   :  { %2590 = vmatprep.subr.bf16.mxu1 %v4313_v6  ;;  %v4394_v6 = vld [vmem:[%s5656_s3 + $0x604] ss:$8 sps:$4 sm:$0xff]  }
 0x1c2   :  { %2591 = vmatpush1.bf16.msra.mxu1 %v4311_v7  ;;  %v745_v7 = vmax.f32 %v5046_v63, 0.0  ;;  %v4400_v63 = vld [vmem:[%s5656_s3 + $0x624] ss:$8 sps:$4 sm:$0xff]  }
 0x1c3   :  { %2592 = vmatprep.subr.bf16.mxu1 %v4316_v8  ;;  %v4392_v8 = vld [vmem:[%s5656_s3 + $0x600] ss:$8 sps:$4 sm:$0xff]  }
 0x1c6   :  { %2593 = vmatpush1.bf16.msra.mxu1 %v4314_v9  ;;  %v3839_v9 = vpack.c.bf16 %v742_v4, %v742_v4  ;;  %v4467_v4 = vld [vmem:[%s5656_s3 + $0x790] ss:$8 sps:$4 sm:$0xff]  }
 0x1c7   :  { %2594 = vmatprep.subr.bf16.mxu1 %v4319_v10  ;;  %v4397_v10 = vld [vmem:[%s5656_s3 + $0x614] ss:$8 sps:$4 sm:$0xff]  }
 0x1ca   :  { %2595 = vmatpush1.bf16.msra.mxu1 %v4317_v11  ;;  %v3842_v11 = vpack.c.bf16 %v745_v7, %v745_v7  ;;  %v4470_v7 = vld [vmem:[%s5656_s3 + $0x7a0] ss:$8 sps:$4 sm:$0xff]  }
 0x1cb   :  { %2596 = vmatprep.subr.bf16.mxu1 %v4322_v12  ;;  %v4398_v12 = vld [vmem:[%s5656_s3 + $0x620] ss:$8 sps:$4 sm:$0xff]  }
 0x1ce   :  { %2597 = vmatpush1.bf16.msra.mxu1 %v4320_v13  ;;  %v4403_v13 = vld [vmem:[%s5656_s3 + $0x634] ss:$8 sps:$4 sm:$0xff]  }
 0x1cf   :  { %2598 = vmatprep.subr.bf16.mxu1 %v4325_v14  ;;  %v4401_v14 = vld [vmem:[%s5656_s3 + $0x630] ss:$8 sps:$4 sm:$0xff]  }
 0x1d2   :  { %2599 = vmatpush1.bf16.msra.mxu1 %v4323_v15  ;;  %v4406_v15 = vld [vmem:[%s5656_s3 + $0x644] ss:$8 sps:$4 sm:$0xff]  }
 0x1d3   :  { %2600 = vmatprep.subr.bf16.mxu1 %v4328_v16  ;;  %v4404_v16 = vld [vmem:[%s5656_s3 + $0x640] ss:$8 sps:$4 sm:$0xff]  }
 0x1d6   :  { %2601 = vmatpush1.bf16.msra.mxu1 %v4326_v17  ;;  %v4409_v17 = vld [vmem:[%s5656_s3 + $0x654] ss:$8 sps:$4 sm:$0xff]  }
 0x1d7   :  { %2602 = vmatprep.subr.bf16.mxu1 %v4331_v18  ;;  %v4407_v18 = vld [vmem:[%s5656_s3 + $0x650] ss:$8 sps:$4 sm:$0xff]  }
 0x1da   :  { %2603 = vmatpush1.bf16.msra.mxu1 %v4329_v20  ;;  %v4412_v20 = vld [vmem:[%s5656_s3 + $0x664] ss:$8 sps:$4 sm:$0xff]  }
 0x1db   :  { %2604 = vmatprep.subr.bf16.mxu1 %v4334_v21  ;;  %v4410_v21 = vld [vmem:[%s5656_s3 + $0x660] ss:$8 sps:$4 sm:$0xff]  }
 0x1de   :  { %2605 = vmatpush1.bf16.msra.mxu1 %v4332_v22  ;;  %v4415_v22 = vld [vmem:[%s5656_s3 + $0x674] ss:$8 sps:$4 sm:$0xff]  }
 0x1df   :  { %2606 = vmatprep.subr.bf16.mxu1 %v4337_v23  ;;  %v4413_v23 = vld [vmem:[%s5656_s3 + $0x670] ss:$8 sps:$4 sm:$0xff]  }
 0x1e2   :  { %2607 = vmatpush1.bf16.msra.mxu1 %v4335_v24  ;;  %v4418_v24 = vld [vmem:[%s5656_s3 + $0x684] ss:$8 sps:$4 sm:$0xff]  }
 0x1e3   :  { %2608 = vmatprep.subr.bf16.mxu1 %v4340_v25  ;;  %v4416_v25 = vld [vmem:[%s5656_s3 + $0x680] ss:$8 sps:$4 sm:$0xff]  }
 0x1e6   :  { %2609 = vmatpush1.bf16.msra.mxu1 %v4338_v26  ;;  %v4421_v26 = vld [vmem:[%s5656_s3 + $0x694] ss:$8 sps:$4 sm:$0xff]  }
 0x1e7   :  { %2610 = vmatprep.subr.bf16.mxu1 %v4343_v27  ;;  %v4419_v27 = vld [vmem:[%s5656_s3 + $0x690] ss:$8 sps:$4 sm:$0xff]  }
 0x1ea   :  { %2611 = vmatpush1.bf16.msra.mxu1 %v4341_v28  ;;  %v4424_v28 = vld [vmem:[%s5656_s3 + $0x6a4] ss:$8 sps:$4 sm:$0xff]  }
 0x1eb   :  { %2621 = vmatprep.subr.bf16.mxu1 %v4346_v30  ;;  %v4427_v30 = vld [vmem:[%s5656_s3 + $0x6b4] ss:$8 sps:$4 sm:$0xff]  }
 0x1ed   :  { %2613 = vmatmul.mubr.bf16.vlgmr.msra.gmra.mrb[0].mxu1 %v3837_v33  ;;  %v4428_v33 = vld [vmem:[%s5656_s3 + $0x6c0] ss:$8 sps:$4 sm:$0xff]  }
 0x1ee   :  { %2622 = vmatpush1.bf16.msra.mxu1 %v4344_v32  ;;  %2653 = vmatprep.mubr.bf16.mxu1 %v3840_v35  ;;  %v4430_v32 = vld [vmem:[%s5656_s3 + $0x6c4] ss:$8 sps:$4 sm:$0xff]   ;;  %v4431_v35 = vld [vmem:[%s5656_s3 + $0x6d0] ss:$8 sps:$4 sm:$0xff]  }
 0x1ef   :  { %2623 = vmatprep.subr.bf16.mxu1 %v4349_v34  ;;  %v4433_v34 = vld [vmem:[%s5656_s3 + $0x6d4] ss:$8 sps:$4 sm:$0xff]  }
 0x1f2   :  { %2624 = vmatpush1.bf16.msra.mxu1 %v4347_v41  ;;  %v4436_v41 = vld [vmem:[%s5656_s3 + $0x6e4] ss:$8 sps:$4 sm:$0xff]  }
 0x1f3   :  { %2625 = vmatprep.subr.bf16.mxu1 %v4352_v45  ;;  %v4434_v45 = vld [vmem:[%s5656_s3 + $0x6e0] ss:$8 sps:$4 sm:$0xff]  }
 0x1f6   :  { %2626 = vmatpush1.bf16.msra.mxu1 %v4350_v36  ;;  %v4439_v36 = vld [vmem:[%s5656_s3 + $0x6f4] ss:$8 sps:$4 sm:$0xff]  }
 0x1f7   :  { %2627 = vmatprep.subr.bf16.mxu1 %v4355_v37  ;;  %v4437_v37 = vld [vmem:[%s5656_s3 + $0x6f0] ss:$8 sps:$4 sm:$0xff]  }
 0x1fa   :  { %2628 = vmatpush1.bf16.msra.mxu1 %v4353_v39  ;;  %v744_v39 = vmax.f32 %v5040_v59, 0.0  ;;  %v4443_v59 = vld [vmem:[%s5656_s3 + $0x710] ss:$8 sps:$4 sm:$0xff]  }
 0x1fb   :  { %2629 = vmatprep.subr.bf16.mxu1 %v4358_v40  ;;  %v4442_v40 = vld [vmem:[%s5656_s3 + $0x704] ss:$8 sps:$4 sm:$0xff]  }
 0x1fe   :  { %2630 = vmatpush1.bf16.msra.mxu1 %v4356_v42  ;;  %v747_v42 = vmax.f32 %v5043_v61, 0.0  ;;  %v4448_v61 = vld [vmem:[%s5656_s3 + $0x724] ss:$8 sps:$4 sm:$0xff]  }
 0x1ff   :  { %2631 = vmatprep.subr.bf16.mxu1 %v4361_v43  ;;  %v4440_v43 = vld [vmem:[%s5656_s3 + $0x700] ss:$8 sps:$4 sm:$0xff]  }
 0x202   :  { %2632 = vmatpush1.bf16.msra.mxu1 %v4359_v44  ;;  %v3841_v44 = vpack.c.bf16 %v744_v39, %v744_v39 }
 0x203   :  { %2633 = vmatprep.subr.bf16.mxu1 %v4364_v46  ;;  %v4445_v46 = vld [vmem:[%s5656_s3 + $0x714] ss:$8 sps:$4 sm:$0xff]  }
 0x206   :  { %2634 = vmatpush1.bf16.msra.mxu1 %v4362_v48  ;;  %v3844_v48 = vpack.c.bf16 %v747_v42, %v747_v42  ;;  %v2817_v42 = vld [vmem:[#allocation5 + $0x180] sm:$0xff] }
 0x207   :  { %2635 = vmatprep.subr.bf16.mxu1 %v4367_v49  ;;  %v4446_v49 = vld [vmem:[%s5656_s3 + $0x720] ss:$8 sps:$4 sm:$0xff]  }
 0x20a   :  { %2636 = vmatpush1.bf16.msra.mxu1 %v4365_v50  ;;  %v4451_v50 = vld [vmem:[%s5656_s3 + $0x734] ss:$8 sps:$4 sm:$0xff]  }
 0x20b   :  { %2637 = vmatprep.subr.bf16.mxu1 %v4370_v51  ;;  %v4449_v51 = vld [vmem:[%s5656_s3 + $0x730] ss:$8 sps:$4 sm:$0xff]  }
 0x20e   :  { %2638 = vmatpush1.bf16.msra.mxu1 %v4368_v52  ;;  %v4454_v52 = vld [vmem:[%s5656_s3 + $0x744] ss:$8 sps:$4 sm:$0xff]  }
 0x20f   :  { %2639 = vmatprep.subr.bf16.mxu1 %v4373_v5 }
 0x212   :  { %2640 = vmatpush1.bf16.msra.mxu1 %v4371_v53 }
 0x213   :  { %2641 = vmatprep.subr.bf16.mxu1 %v4376_v54 }
 0x216   :  { %2642 = vmatpush1.bf16.msra.mxu1 %v4374_v56  ;;  %v4452_v56 = vld [vmem:[%s5656_s3 + $0x740] ss:$8 sps:$4 sm:$0xff]  }
 0x217   :  { %2643 = vmatprep.subr.bf16.mxu1 %v4379_v57 }
 0x21a   :  { %2644 = vmatpush1.bf16.msra.mxu1 %v4377_v58  ;;  %v4457_v58 = vld [vmem:[%s5656_s3 + $0x754] ss:$8 sps:$4 sm:$0xff]  }
 0x21b   :  { %2645 = vmatprep.subr.bf16.mxu1 %v4382_v60  ;;  %v4455_v60 = vld [vmem:[%s5656_s3 + $0x750] ss:$8 sps:$4 sm:$0xff]  }
 0x21e   :  { %2646 = vmatpush1.bf16.msra.mxu1 %v4380_v62  ;;  %v4460_v62 = vld [vmem:[%s5656_s3 + $0x764] ss:$8 sps:$4 sm:$0xff]  }
 0x21f   :  { %2647 = vmatprep.subr.bf16.mxu1 %v4385_v19  ;;  %v4458_v19 = vld [vmem:[%s5656_s3 + $0x760] ss:$8 sps:$4 sm:$0xff]  }
 0x222   :  { %2648 = vmatpush1.bf16.msra.mxu1 %v4383_v47  ;;  %v4463_v47 = vld [vmem:[%s5656_s3 + $0x774] ss:$8 sps:$4 sm:$0xff]  }
 0x223   :  { %2649 = vmatprep.subr.bf16.mxu1 %v4388_v0  ;;  %v4461_v0 = vld [vmem:[%s5656_s3 + $0x770] ss:$8 sps:$4 sm:$0xff]  }
 0x226   :  { %2650 = vmatpush1.bf16.msra.mxu1 %v4386_v1  ;;  %v4466_v1 = vld [vmem:[%s5656_s3 + $0x784] ss:$8 sps:$4 sm:$0xff]  }
 0x227   :  { %2651 = vmatprep.subr.bf16.mxu1 %v4391_v2  ;;  %v4464_v2 = vld [vmem:[%s5656_s3 + $0x780] ss:$8 sps:$4 sm:$0xff]  }
 0x22a   :  { %2652 = vmatpush1.bf16.msra.mxu1 %v4389_v3  ;;  %v4469_v3 = vld [vmem:[%s5656_s3 + $0x794] ss:$8 sps:$4 sm:$0xff]  }
 0x22b   :  { %2662 = vmatprep.subr.bf16.mxu1 %v4394_v6  ;;  %v4472_v6 = vld [vmem:[%s5656_s3 + $0x7a4] ss:$8 sps:$4 sm:$0xff]  }
 0x22d   :  { %2654 = vmatmul.mubr.bf16.vlgmr.msra.gmra.mrb[0].mxu1 %v3839_v9  ;;  %v4473_v9 = vld [vmem:[%s5656_s3 + $0x7b0] ss:$8 sps:$4 sm:$0xff]  }
 0x22e   :  { %2663 = vmatpush1.bf16.msra.mxu1 %v4392_v8  ;;  %2694 = vmatprep.mubr.bf16.mxu1 %v3842_v11  ;;  %v4475_v8 = vld [vmem:[%s5656_s3 + $0x7b4] ss:$8 sps:$4 sm:$0xff]   ;;  %v4476_v11 = vld [vmem:[%s5656_s3 + $0x7c0] ss:$8 sps:$4 sm:$0xff]  }
 0x22f   :  { %2664 = vmatprep.subr.bf16.mxu1 %v4397_v10  ;;  %v4478_v10 = vld [vmem:[%s5656_s3 + $0x7c4] ss:$8 sps:$4 sm:$0xff]  }
 0x232   :  { %2665 = vmatpush1.bf16.msra.mxu1 %v4395_v38  ;;  %v4481_v38 = vld [vmem:[%s5656_s3 + $0x7d4] ss:$8 sps:$4 sm:$0xff]  }
 0x233   :  { %2666 = vmatprep.subr.bf16.mxu1 %v4400_v63  ;;  %v4479_v63 = vld [vmem:[%s5656_s3 + $0x7d0] ss:$8 sps:$4 sm:$0xff]  }
 0x236   :  { %2667 = vmatpush1.bf16.msra.mxu1 %v4398_v12  ;;  %v4484_v12 = vld [vmem:[%s5656_s3 + $0x7e4] ss:$8 sps:$4 sm:$0xff]  }
 0x237   :  { %2668 = vmatprep.subr.bf16.mxu1 %v4403_v13  ;;  %v4482_v13 = vld [vmem:[%s5656_s3 + $0x7e0] ss:$8 sps:$4 sm:$0xff]  }
 0x23a   :  { %2669 = vmatpush1.bf16.msra.mxu1 %v4401_v14  ;;  %v4487_v14 = vld [vmem:[%s5656_s3 + $0x7f4] ss:$8 sps:$4 sm:$0xff]  }
 0x23b   :  { %2670 = vmatprep.subr.bf16.mxu1 %v4406_v15  ;;  %v4485_v15 = vld [vmem:[%s5656_s3 + $0x7f0] ss:$8 sps:$4 sm:$0xff]  }
 0x23e   :  { %2671 = vmatpush1.bf16.msra.mxu1 %v4404_v16  ;;  %v746_v16 = vmax.f32 %v5031_v55, 0.0 }
 0x23f   :  { %2672 = vmatprep.subr.bf16.mxu1 %v4409_v17 }
 0x240   :  { %v3843_v17 = vpack.c.bf16 %v746_v16, %v746_v16 }
 0x242   :  { %2673 = vmatpush1.bf16.msra.mxu1 %v4407_v18  ;;  %v2769_v18 = vld [vmem:[#allocation5] sm:$0xff] }
 0x243   :  { %2674 = vmatprep.subr.bf16.mxu1 %v4412_v20  ;;  %v2773_v20 = vld [vmem:[#allocation5 + $0x20] sm:$0xff] }
 0x246   :  { %2675 = vmatpush1.bf16.msra.mxu1 %v4410_v21  ;;  %v3711_v21 = vcombine.high %v2769_v18, %v2773_v20 }
 0x247   :  { %2676 = vmatprep.subr.bf16.mxu1 %v4415_v22  ;;  %v3710_v22 = vcombine.low %v2769_v18, %v2773_v20 }
 0x248   :  { %3195 = vmatprep.subr.bf16.mxu0 %v3711_v21 }
 0x249   :  { %3196 = vmatpush1.bf16.msra.mxu0 %v3710_v22  ;;  %v2763_v22 = vld [vmem:[%s5660_s7] sm:$0xff] }
 0x24a   :  { %2677 = vmatpush1.bf16.msra.mxu1 %v4413_v23  ;;  %v2777_v23 = vld [vmem:[#allocation5 + $0x40] sm:$0xff] }
 0x24b   :  { %2678 = vmatprep.subr.bf16.mxu1 %v4418_v24  ;;  %v2781_v24 = vld [vmem:[#allocation5 + $0x60] sm:$0xff] }
 0x24e   :  { %2679 = vmatpush1.bf16.msra.mxu1 %v4416_v25  ;;  %v3719_v25 = vcombine.high %v2777_v23, %v2781_v24 }
 0x24f   :  { %2680 = vmatprep.subr.bf16.mxu1 %v4421_v26  ;;  %v3718_v26 = vcombine.low %v2777_v23, %v2781_v24 }
 0x250   :  { %3197 = vmatprep.subr.bf16.mxu0 %v3719_v25  ;;  %v2778_v25 = vld [vmem:[#allocation5 + $0x48] sm:$0xff] }
 0x251   :  { %3198 = vmatpush1.bf16.msra.mxu0 %v3718_v26  ;;  %v2782_v26 = vld [vmem:[#allocation5 + $0x68] sm:$0xff] }
 0x252   :  { %2681 = vmatpush1.bf16.msra.mxu1 %v4419_v27  ;;  %v2785_v27 = vld [vmem:[#allocation5 + $0x80] sm:$0xff] }
 0x253   :  { %2682 = vmatprep.subr.bf16.mxu1 %v4424_v28  ;;  %v2789_v28 = vld [vmem:[#allocation5 + $0xa0] sm:$0xff] }
 0x254   :  { %v3726_v55 = vcombine.low %v2785_v27, %v2789_v28 }
 0x256   :  { %2683 = vmatpush1.bf16.msra.mxu1 %v4422_v29  ;;  %v3727_v29 = vcombine.high %v2785_v27, %v2789_v28 }
 0x257   :  { %2684 = vmatprep.subr.bf16.mxu1 %v4427_v30  ;;  %v2793_v30 = vld [vmem:[#allocation5 + $0xc0] sm:$0xff] }
 0x258   :  { %3199 = vmatprep.subr.bf16.mxu0 %v3727_v29  ;;  %v3721_v29 = vcombine.high %v2778_v25, %v2782_v26 }
 0x259   :  { %3200 = vmatpush1.bf16.msra.mxu0 %v3726_v55  ;;  %v2786_v55 = vld [vmem:[#allocation5 + $0x88] sm:$0xff] }
 0x25a   :  { %2685 = vmatpush1.bf16.msra.mxu1 %v4425_v31  ;;  %v2797_v31 = vld [vmem:[#allocation5 + $0xe0] sm:$0xff] }
 0x25b   :  { %2686 = vmatprep.subr.bf16.mxu1 %v4430_v32  ;;  %v3735_v32 = vcombine.high %v2793_v30, %v2797_v31 }
 0x25d   :  { %3201 = vmatprep.subr.bf16.mxu0 %v3735_v32 }
 0x25e   :  { %2687 = vmatpush1.bf16.msra.mxu1 %v4428_v33  ;;  %v3734_v33 = vcombine.low %v2793_v30, %v2797_v31  ;;  %v2790_v30 = vld [vmem:[#allocation5 + $0xa8] sm:$0xff]  ;;  %v3720_v31 = vcombine.low %v2778_v25, %v2782_v26  ;;  %v2772_v26 = vld [vmem:[#allocation5 + $0x18] sm:$0xff] }
 0x25f   :  { %2688 = vmatprep.subr.bf16.mxu1 %v4433_v34  ;;  %v2801_v34 = vld [vmem:[#allocation5 + $0x100] sm:$0xff]  ;;  %v3729_v32 = vcombine.high %v2786_v55, %v2790_v30 }
 0x260   :  { %3202 = vmatpush1.bf16.msra.mxu0 %v3734_v33  ;;  %v2794_v33 = vld [vmem:[#allocation5 + $0xc8] sm:$0xff] }
 0x262   :  { %2689 = vmatpush1.bf16.msra.mxu1 %v4431_v35  ;;  %v2805_v35 = vld [vmem:[#allocation5 + $0x120] sm:$0xff] }
 0x263   :  { %2690 = vmatprep.subr.bf16.mxu1 %v4436_v41  ;;  %v3743_v41 = vcombine.high %v2801_v34, %v2805_v35 }
 0x265   :  { %3203 = vmatprep.subr.bf16.mxu0 %v3743_v41 }
 0x266   :  { %2691 = vmatpush1.bf16.msra.mxu1 %v4434_v45  ;;  %v3742_v45 = vcombine.low %v2801_v34, %v2805_v35  ;;  %v2798_v34 = vld [vmem:[#allocation5 + $0xe8] sm:$0xff]  ;;  %v3728_v35 = vcombine.low %v2786_v55, %v2790_v30  ;;  %v2780_v30 = vld [vmem:[#allocation5 + $0x58] sm:$0xff] }
 0x267   :  { %2692 = vmatprep.subr.bf16.mxu1 %v4439_v36  ;;  %v2809_v36 = vld [vmem:[#allocation5 + $0x140] sm:$0xff]  ;;  %v3737_v41 = vcombine.high %v2794_v33, %v2798_v34 }
 0x268   :  { %3204 = vmatpush1.bf16.msra.mxu0 %v3742_v45  ;;  %v2802_v45 = vld [vmem:[#allocation5 + $0x108] sm:$0xff] }
 0x26a   :  { %2693 = vmatpush1.bf16.msra.mxu1 %v4437_v37  ;;  %v2813_v37 = vld [vmem:[#allocation5 + $0x160] sm:$0xff] }
 0x26b   :  { %2703 = vmatprep.subr.bf16.mxu1 %v4442_v40  ;;  %v3751_v39 = vcombine.high %v2809_v36, %v2813_v37  ;;  %v3750_v40 = vcombine.low %v2809_v36, %v2813_v37  ;;  %v2806_v36 = vld [vmem:[#allocation5 + $0x128] sm:$0xff]  ;;  %v3736_v37 = vcombine.low %v2794_v33, %v2798_v34  ;;  %v2788_v34 = vld [vmem:[#allocation5 + $0x98] sm:$0xff] }
 0x26d   :  { %2695 = vmatmul.mubr.bf16.vlgmr.msra.gmra.mrb[0].mxu1 %v3841_v44  ;;  %3205 = vmatprep.subr.bf16.mxu0 %v3751_v39  ;;  %v3745_v39 = vcombine.high %v2802_v45, %v2806_v36 }
 0x26e   :  { %2704 = vmatpush1.bf16.msra.mxu1 %v4440_v43  ;;  %2735 = vmatprep.mubr.bf16.mxu1 %v3844_v48  ;;  %v2821_v43 = vld [vmem:[#allocation5 + $0x1a0] sm:$0xff] }
 0x26f   :  { %2705 = vmatprep.subr.bf16.mxu1 %v4445_v46  ;;  %3206 = vmatpush1.bf16.msra.mxu0 %v3750_v40  ;;  %v3759_v44 = vcombine.high %v2817_v42, %v2821_v43  ;;  %v3758_v46 = vcombine.low %v2817_v42, %v2821_v43  ;;  %v2825_v48 = vld [vmem:[#allocation5 + $0x1c0] sm:$0xff]  ;;  %v2810_v40 = vld [vmem:[#allocation5 + $0x148] sm:$0xff]  ;;  %v3744_v43 = vcombine.low %v2802_v45, %v2806_v36  ;;  %v2796_v36 = vld [vmem:[#allocation5 + $0xd8] sm:$0xff] }
 0x270   :  { %v2814_v42 = vld [vmem:[#allocation5 + $0x168] sm:$0xff] }
 0x271   :  { %3207 = vmatprep.subr.bf16.mxu0 %v3759_v44  ;;  %v3753_v44 = vcombine.high %v2810_v40, %v2814_v42 }
 0x272   :  { %2706 = vmatpush1.bf16.msra.mxu1 %v4443_v59  ;;  %v2829_v59 = vld [vmem:[#allocation5 + $0x1e0] sm:$0xff] }
 0x273   :  { %2707 = vmatprep.subr.bf16.mxu1 %v4448_v61  ;;  %3208 = vmatpush1.bf16.msra.mxu0 %v3758_v46  ;;  %v3767_v61 = vcombine.high %v2825_v48, %v2829_v59  ;;  %v2818_v46 = vld [vmem:[#allocation5 + $0x188] sm:$0xff] }
 0x275   :  { %3209 = vmatprep.subr.bf16.mxu0 %v3767_v61 }
 0x276   :  { %2708 = vmatpush1.bf16.msra.mxu1 %v4446_v49  ;;  %v3766_v49 = vcombine.low %v2825_v48, %v2829_v59  ;;  %v2822_v48 = vld [vmem:[#allocation5 + $0x1a8] sm:$0xff]  ;;  %v3752_v59 = vcombine.low %v2810_v40, %v2814_v42  ;;  %v2804_v42 = vld [vmem:[#allocation5 + $0x118] sm:$0xff] }
 0x277   :  { %2709 = vmatprep.subr.bf16.mxu1 %v4451_v50  ;;  %v2770_v50 = vld [vmem:[#allocation5 + $0x8] sm:$0xff]  ;;  %v3761_v61 = vcombine.high %v2818_v46, %v2822_v48 }
 0x278   :  { %v5510_v5 = vpop.f32.mrb[16].mxu0  ;;  %3210 = vmatpush1.bf16.msra.mxu0 %v3766_v49  ;;  %v2826_v49 = vld [vmem:[#allocation5 + $0x1c8] sm:$0xff] }
 0x279   :  { %v5512_v53 = vpop.f32.mrb[17].mxu0 }
 0x27a   :  { %v2495_v54 = vpop.f32.mrb[18].mxu0  ;;  %2710 = vmatpush1.bf16.msra.mxu1 %v4449_v51  ;;  %v2774_v51 = vld [vmem:[#allocation5 + $0x28] sm:$0xff] }
 0x27b   :  { %v2496_v57 = vpop.f32.mrb[19].mxu0  ;;  %2711 = vmatprep.subr.bf16.mxu1 %v4454_v52  ;;  %v4546_v52 = vmov 0   ;;  %v3712_v54 = vcombine.low %v2770_v50, %v2774_v51 }
 0x27c   :  { %3227 = vmatprep.mubr.bf16.mxu0 %v4546_v52  ;;  %v1070_v57 = vlaneseq }
 0x27e   :  { %2712 = vmatpush1.bf16.msra.mxu1 %v4452_v56  ;;  %v3713_v56 = vcombine.high %v2770_v50, %v2774_v51  ;;  %v2830_v50 = vld [vmem:[#allocation5 + $0x1e8] sm:$0xff]  ;;  %v3760_v51 = vcombine.low %v2818_v46, %v2822_v48  ;;  %v2812_v48 = vld [vmem:[#allocation5 + $0x158] sm:$0xff] }
 0x27f   :  { %2713 = vmatprep.subr.bf16.mxu1 %v4457_v58  ;;  %v5585_v58 = vshrl.u32 %v1070_v57, 7  ;;  %v2775_v57 = vld [vmem:[#allocation5 + $0x30] sm:$0xff] }
 0x280   :  { %3236 = vmatprep.subr.bf16.mxu0 %v3713_v56  ;;  %v2771_v56 = vld [vmem:[#allocation5 + $0x10] sm:$0xff] }
 0x282   :  { %2714 = vmatpush1.bf16.msra.mxu1 %v4455_v60  ;;  %v1072_v60 = vsub.s32 0, %v5585_v58 }
 0x283   :  { %2715 = vmatprep.subr.bf16.mxu1 %v4460_v62  ;;  %v1068_v62 = vld [vmem:[%s5657_s4] sm:$0x3] }
 0x286   :  { %2716 = vmatpush1.bf16.msra.mxu1 %v4458_v19  ;;  %v1076_v19 = vsub.s32 1, %v5585_v58 }
 0x287   :  { %2717 = vmatprep.subr.bf16.mxu1 %v4463_v47  ;;  %v1073_v47 = vrot.slane %v1068_v62, %v1072_v60 }
 0x28a   :  { %2718 = vmatpush1.bf16.msra.mxu1 %v4461_v0  ;;  %v1077_v0 = vrot.slane %v1068_v62, %v1076_v19  ;;  %v3768_v62 = vcombine.low %v2826_v49, %v2830_v50 }
 0x28b   :  { %2719 = vmatprep.subr.bf16.mxu1 %v4466_v1  ;;  %v3989_v1 = vadd.f32 %v5510_v5, %v1073_v47  ;;  %v3715_v47 = vcombine.high %v2771_v56, %v2775_v57 }
 0x28e   :  { %2720 = vmatpush1.bf16.msra.mxu1 %v4464_v2  ;;  %v3991_v2 = vadd.f32 %v5512_v53, %v1077_v0  ;;  %v2779_v0 = vld [vmem:[#allocation5 + $0x50] sm:$0xff] }
 0x28f   :  { %2721 = vmatprep.subr.bf16.mxu1 %v4469_v3 }
 0x292   :  { %2722 = vmatpush1.bf16.msra.mxu1 %v4467_v4 }
 0x293   :  { %2723 = vmatprep.subr.bf16.mxu1 %v4472_v6 }
 0x296   :  { %2724 = vmatpush1.bf16.msra.mxu1 %v4470_v7 }
 0x297   :  { %2725 = vmatprep.subr.bf16.mxu1 %v4475_v8 }
 0x29a   :  { %2726 = vmatpush1.bf16.msra.mxu1 %v4473_v9 }
 0x29b   :  { %2727 = vmatprep.subr.bf16.mxu1 %v4478_v10 }
 0x29e   :  { %2728 = vmatpush1.bf16.msra.mxu1 %v4476_v11 }
 0x29f   :  { %2729 = vmatprep.subr.bf16.mxu1 %v4481_v38 }
 0x2a2   :  { %2730 = vmatpush1.bf16.msra.mxu1 %v4479_v63 }
 0x2a3   :  { %2731 = vmatprep.subr.bf16.mxu1 %v4484_v12 }
 0x2a6   :  { %2732 = vmatpush1.bf16.msra.mxu1 %v4482_v13 }
 0x2a7   :  { %2733 = vmatprep.subr.bf16.mxu1 %v4487_v14 }
 0x2aa   :  { %2734 = vmatpush1.bf16.msra.mxu1 %v4485_v15 }
 0x2ad   :  { %2736 = vmatmul.mubr.bf16.vlgmr.msra.gmra.mrb[0].mxu1 %v3843_v17 }
 0x380   :  { %v2737_v3 = vpop.f32.mrb[0].mxu1 }
 0x381   :  { %v3990_v4 = vadd.f32 %v3989_v1, %v2737_v3  ;;  %v2739_v6 = vpop.f32.mrb[1].mxu1  ;;  %v2783_v1 = vld [vmem:[#allocation5 + $0x70] sm:$0xff] }
 0x382   :  { %v3992_v7 = vadd.f32 %v3991_v2, %v2739_v6  ;;  %v2741_v8 = vpop.f32.mrb[2].mxu1  ;;  %v3714_v2 = vcombine.low %v2771_v56, %v2775_v57  ;;  %v3723_v3 = vcombine.high %v2779_v0, %v2783_v1  ;;  %v2791_v6 = vld [vmem:[#allocation5 + $0xb0] sm:$0xff]  ;;  %v2828_v56 = vld [vmem:[#allocation5 + $0x1d8] sm:$0xff] }
 0x383   :  { %2766 = vst [vmem:[%s5662_s9] sm:$0xff] %v3990_v4  ;;  %v2742_v9 = vpop.f32.mrb[3].mxu1  ;;  %v2832_v57 = vld [vmem:[#allocation5 + $0x1f8] sm:$0xff] }
 0x384   :  { %v2747_v10 = vand.u32 2147483647, %v3992_v7  ;;  %v2744_v17 = vmax.f32 %v3992_v7, 0.0  ;;  %vm2745_vm1 = vcmp.ne.f32.partialorder %v3992_v7, %v3992_v7  ;;  %v2795_v9 = vld [vmem:[#allocation5 + $0xd0] sm:$0xff] }
 0x386   :  { %v2748_v11 = vsub.f32 0.0, %v2747_v10  ;;  %v2799_v10 = vld [vmem:[#allocation5 + $0xf0] sm:$0xff] }
 0x388   :  { %v2749_v38 = vmul.f32 1.442695, %v2748_v11 }
 0x38a   :  { %4488 = vpow2.f32 %v2749_v38  ;;  %v3739_v38 = vcombine.high %v2795_v9, %v2799_v10 }
 0x394   :  { %v4489_v63 = vpop.eup %4488 }
 0x395   :  { %v2751_v12 = vadd.f32 1.0, %v4489_v63  ;;  %v2754_v5 = vmul.f32 -0.5, %v4489_v63  ;;  %v2757_v53 = vand.u32 2147483647, %v4489_v63 }
 0x397   :  { %4490 = vlog2.f32 %v2751_v12  ;;  %v2755_v13 = vadd.f32 1.0, %v2754_v5  ;;  %vm2758_vm0 = vcmp.lt.f32.partialorder %v2757_v53, 0.0004427343  ;;  %v2807_v12 = vld [vmem:[#allocation5 + $0x130] sm:$0xff]  ;;  %v3738_v5 = vcombine.low %v2795_v9, %v2799_v10 }
 0x398   :  { %v2811_v53 = vld [vmem:[#allocation5 + $0x150] sm:$0xff]  ;;  %v2845_v10 = vsub.s32 2, %v5585_v58 }
 0x399   :  { %v2756_v16 = vmul.f32 %v4489_v63, %v2755_v13  ;;  %v2803_v63 = vld [vmem:[#allocation5 + $0x110] sm:$0xff] }
 0x39a   :  { %v3747_v13 = vcombine.high %v2803_v63, %v2807_v12 }
 0x3a1   :  { %v4491_v14 = vpop.eup %4490 }
 0x3a2   :  { %v2753_v15 = vmul.f32 0.6931472, %v4491_v14  ;;  %v2815_v14 = vld [vmem:[#allocation5 + $0x170] sm:$0xff] }
 0x3a4   :  { %v2759_v18 = vsel %vm2758_vm0, %v2756_v16, %v2753_v15  ;;  %v3746_v15 = vcombine.low %v2803_v63, %v2807_v12  ;;  %v3755_v16 = vcombine.high %v2811_v53, %v2815_v14 }
 0x3a5   :  { %v2760_v20 = vadd.f32 %v2759_v18, %v2744_v17  ;;  %v2819_v17 = vld [vmem:[#allocation5 + $0x190] sm:$0xff] }
 0x3a6   :  { %v2823_v18 = vld [vmem:[#allocation5 + $0x1b0] sm:$0xff] }
 0x3a7   :  { %v2761_v21 = vsel %vm2745_vm1, %v3992_v7, %v2760_v20  ;;  %v3722_v7 = vcombine.low %v2779_v0, %v2783_v1  ;;  %v3754_v20 = vcombine.low %v2811_v53, %v2815_v14  ;;  %v3772_v0 = vcombine.low %v2828_v56, %v2832_v57  ;;  %v2833_v1 = vld [vmem:[%s5659_s6] sm:$0xff] }
 0x3a8   :  { %v2762_v23 = vadd.f32 1e-07, %v2761_v21  ;;  %v3763_v21 = vcombine.high %v2819_v17, %v2823_v18  ;;  %v2853_v14 = vsub.s32 4, %v5585_v58 }
 0x3aa   :  { %2767 = vst [vmem:[%s5663_s10] sm:$0xff] %v2762_v23  ;;  %v2764_v24 = vmul.f32 %v2763_v22, %v2762_v23  ;;  %v2827_v22 = vld [vmem:[#allocation5 + $0x1d0] sm:$0xff] }
 0x3ab   :  { %v2831_v23 = vld [vmem:[#allocation5 + $0x1f0] sm:$0xff] }
 0x3ac   :  { %v2765_v27 = vadd.f32 %v3990_v4, %v2764_v24  ;;  %v2787_v4 = vld [vmem:[#allocation5 + $0x90] sm:$0xff]  ;;  %v3762_v24 = vcombine.low %v2819_v17, %v2823_v18  ;;  %v3771_v25 = vcombine.high %v2827_v22, %v2831_v23 }
 0x3ad   :  { %v3731_v8 = vcombine.high %v2787_v4, %v2791_v6  ;;  %v3730_v11 = vcombine.low %v2787_v4, %v2791_v6 }
 0x3ae   :  { %v5607_v28 = vpack.c.bf16 %v2765_v27, %v2765_v27  ;;  %v2776_v27 = vld [vmem:[#allocation5 + $0x38] sm:$0xff] }
 0x3af   :  { %v3717_v55 = vcombine.high %v2772_v26, %v2776_v27 }
 0x3b0   :  { %3228 = vmatmul.mubr.bf16.vlgmr.msra.gmra.mrb[20].mxu0 %v5607_v28 }
 0x3b1   :  { %3237 = vmatpush1.bf16.msra.mxu0 %v3712_v54  ;;  %3268 = vmatprep.mubr.bf16.mxu0 %v4546_v52  ;;  %v3769_v54 = vcombine.high %v2826_v49, %v2830_v50  ;;  %v2820_v49 = vld [vmem:[#allocation5 + $0x198] sm:$0xff] }
 0x3b2   :  { %3238 = vmatprep.subr.bf16.mxu0 %v3721_v29  ;;  %v3770_v29 = vcombine.low %v2827_v22, %v2831_v23  ;;  %v2824_v50 = vld [vmem:[#allocation5 + $0x1b8] sm:$0xff] }
 0x3b5   :  { %3239 = vmatpush1.bf16.msra.mxu0 %v3720_v31  ;;  %v2784_v31 = vld [vmem:[#allocation5 + $0x78] sm:$0xff] }
 0x3b6   :  { %3240 = vmatprep.subr.bf16.mxu0 %v3729_v32  ;;  %v3716_v32 = vcombine.low %v2772_v26, %v2776_v27  ;;  %v3725_v33 = vcombine.high %v2780_v30, %v2784_v31  ;;  %v2865_v26 = vsub.s32 7, %v5585_v58 }
 0x3b9   :  { %3241 = vmatpush1.bf16.msra.mxu0 %v3728_v35  ;;  %v2792_v35 = vld [vmem:[#allocation5 + $0xb8] sm:$0xff] }
 0x3ba   :  { %3242 = vmatprep.subr.bf16.mxu0 %v3737_v41  ;;  %v3724_v41 = vcombine.low %v2780_v30, %v2784_v31  ;;  %v3733_v45 = vcombine.high %v2788_v34, %v2792_v35 }
 0x3bd   :  { %3243 = vmatpush1.bf16.msra.mxu0 %v3736_v37  ;;  %v2800_v37 = vld [vmem:[#allocation5 + $0xf8] sm:$0xff] }
 0x3be   :  { %3244 = vmatprep.subr.bf16.mxu0 %v3745_v39  ;;  %v3732_v39 = vcombine.low %v2788_v34, %v2792_v35  ;;  %v3741_v40 = vcombine.high %v2796_v36, %v2800_v37 }
 0x3c1   :  { %3245 = vmatpush1.bf16.msra.mxu0 %v3744_v43  ;;  %v2808_v43 = vld [vmem:[#allocation5 + $0x138] sm:$0xff] }
 0x3c2   :  { %3246 = vmatprep.subr.bf16.mxu0 %v3753_v44  ;;  %v3740_v44 = vcombine.low %v2796_v36, %v2800_v37  ;;  %v3749_v46 = vcombine.high %v2804_v42, %v2808_v43 }
 0x3c5   :  { %3247 = vmatpush1.bf16.msra.mxu0 %v3752_v59  ;;  %v2816_v59 = vld [vmem:[#allocation5 + $0x178] sm:$0xff] }
 0x3c6   :  { %3248 = vmatprep.subr.bf16.mxu0 %v3761_v61  ;;  %v3748_v61 = vcombine.low %v2804_v42, %v2808_v43 }
 0x3c9   :  { %3249 = vmatpush1.bf16.msra.mxu0 %v3760_v51  ;;  %v3756_v51 = vcombine.low %v2812_v48, %v2816_v59 }
 0x3ca   :  { %3250 = vmatprep.subr.bf16.mxu0 %v3769_v54  ;;  %v3765_v54 = vcombine.high %v2820_v49, %v2824_v50 }
 0x3cd   :  { %3251 = vmatpush1.bf16.msra.mxu0 %v3768_v62  ;;  %v3764_v62 = vcombine.low %v2820_v49, %v2824_v50 }
 0x3ce   :  { %3277 = vmatprep.subr.bf16.mxu0 %v3715_v47  ;;  %v3773_v47 = vcombine.high %v2828_v56, %v2832_v57 }
 0x3d0   :  { %3269 = vmatmul.mubr.bf16.vlgmr.msra.gmra.mrb[24].mxu0 %v5607_v28 }
 0x3d1   :  { %3278 = vmatpush1.bf16.msra.mxu0 %v3714_v2  ;;  %3309 = vmatprep.mubr.bf16.mxu0 %v4546_v52  ;;  %v2838_v2 = vrot.slane %v2833_v1, %v1072_v60  ;;  %v2849_v60 = vsub.s32 3, %v5585_v58 }
 0x3d2   :  { %3279 = vmatprep.subr.bf16.mxu0 %v3723_v3  ;;  %v2842_v3 = vrot.slane %v2833_v1, %v1076_v19 }
 0x3d3   :  { %v2850_v19 = vrot.slane %v2833_v1, %v2849_v60 }
 0x3d5   :  { %3280 = vmatpush1.bf16.msra.mxu0 %v3722_v7 }
 0x3d6   :  { %3281 = vmatprep.subr.bf16.mxu0 %v3731_v8 }
 0x3d9   :  { %3282 = vmatpush1.bf16.msra.mxu0 %v3730_v11  ;;  %v2846_v11 = vrot.slane %v2833_v1, %v2845_v10 }
 0x3da   :  { %3283 = vmatprep.subr.bf16.mxu0 %v3739_v38 }
 0x3dd   :  { %3284 = vmatpush1.bf16.msra.mxu0 %v3738_v5 }
 0x3de   :  { %3285 = vmatprep.subr.bf16.mxu0 %v3747_v13 }
 0x3e1   :  { %3286 = vmatpush1.bf16.msra.mxu0 %v3746_v15  ;;  %v2857_v15 = vsub.s32 5, %v5585_v58 }
 0x3e2   :  { %3287 = vmatprep.subr.bf16.mxu0 %v3755_v16  ;;  %v2854_v16 = vrot.slane %v2833_v1, %v2853_v14 }
 0x3e3   :  { %v2858_v17 = vrot.slane %v2833_v1, %v2857_v15 }
 0x3e5   :  { %3288 = vmatpush1.bf16.msra.mxu0 %v3754_v20 }
 0x3e6   :  { %3289 = vmatprep.subr.bf16.mxu0 %v3763_v21 }
 0x3e9   :  { %3290 = vmatpush1.bf16.msra.mxu0 %v3762_v24 }
 0x3ea   :  { %3291 = vmatprep.subr.bf16.mxu0 %v3771_v25  ;;  %v2861_v25 = vsub.s32 6, %v5585_v58 }
 0x3ec   :  { %v2862_v27 = vrot.slane %v2833_v1, %v2861_v25 }
 0x3ed   :  { %3292 = vmatpush1.bf16.msra.mxu0 %v3770_v29  ;;  %v2866_v29 = vrot.slane %v2833_v1, %v2865_v26 }
 0x3ee   :  { %3318 = vmatprep.subr.bf16.mxu0 %v3717_v55 }
 0x3f0   :  { %3310 = vmatmul.mubr.bf16.vlgmr.msra.gmra.mrb[28].mxu0 %v5607_v28 }
 0x3f1   :  { %3319 = vmatpush1.bf16.msra.mxu0 %v3716_v32  ;;  %3350 = vmatprep.mubr.bf16.mxu0 %v4546_v52  ;;  %v3757_v52 = vcombine.high %v2812_v48, %v2816_v59 }
 0x3f2   :  { %3320 = vmatprep.subr.bf16.mxu0 %v3725_v33 }
 0x3f5   :  { %3321 = vmatpush1.bf16.msra.mxu0 %v3724_v41 }
 0x3f6   :  { %3322 = vmatprep.subr.bf16.mxu0 %v3733_v45 }
 0x3f9   :  { %3323 = vmatpush1.bf16.msra.mxu0 %v3732_v39 }
 0x3fa   :  { %3324 = vmatprep.subr.bf16.mxu0 %v3741_v40 }
 0x3fd   :  { %3325 = vmatpush1.bf16.msra.mxu0 %v3740_v44 }
 0x3fe   :  { %3326 = vmatprep.subr.bf16.mxu0 %v3749_v46 }
 0x401   :  { %3327 = vmatpush1.bf16.msra.mxu0 %v3748_v61 }
 0x402   :  { %3328 = vmatprep.subr.bf16.mxu0 %v3757_v52 }
 0x405   :  { %3329 = vmatpush1.bf16.msra.mxu0 %v3756_v51 }
 0x406   :  { %3330 = vmatprep.subr.bf16.mxu0 %v3765_v54 }
 0x409   :  { %3331 = vmatpush1.bf16.msra.mxu0 %v3764_v62 }
 0x40a   :  { %3332 = vmatprep.subr.bf16.mxu0 %v3773_v47 }
 0x40d   :  { %3333 = vmatpush1.bf16.msra.mxu0 %v3772_v0 }
 0x410   :  { %3351 = vmatmul.mubr.bf16.vlgmr.msra.gmra.mrb[32].mxu0 %v5607_v28 }
 0x483   :  { %v3229_v4 = vpop.f32.mrb[20].mxu0 }
 0x484   :  { %v3230_v6 = vadd.f32 %v3229_v4, %v2838_v2  ;;  %v3231_v7 = vpop.f32.mrb[21].mxu0 }
 0x485   :  { %v3232_v8 = vadd.f32 %v3231_v7, %v2842_v3  ;;  %v3233_v9 = vpop.f32.mrb[22].mxu0 }
 0x486   :  { %3359 = vst [vmem:[%s5661_s8] sm:$0xff] %v3230_v6  ;;  %v3234_v28 = vpop.f32.mrb[23].mxu0 }
 0x487   :  { %3360 = vst [vmem:[%s5661_s8 + $0x8] sm:$0xff] %v3232_v8 }
 0x4a3   :  { %v3270_v38 = vpop.f32.mrb[24].mxu0 }
 0x4a4   :  { %v3271_v63 = vadd.f32 %v3270_v38, %v2846_v11  ;;  %v3272_v12 = vpop.f32.mrb[25].mxu0 }
 0x4a5   :  { %v3273_v5 = vadd.f32 %v3272_v12, %v2850_v19  ;;  %v3274_v13 = vpop.f32.mrb[26].mxu0 }
 0x4a6   :  { %3361 = vst [vmem:[%s5661_s8 + $0x10] sm:$0xff] %v3271_v63  ;;  %v3275_v53 = vpop.f32.mrb[27].mxu0 }
 0x4a7   :  { %3362 = vst [vmem:[%s5661_s8 + $0x18] sm:$0xff] %v3273_v5 }
 0x4c3   :  { %v3311_v18 = vpop.f32.mrb[28].mxu0 }
 0x4c4   :  { %v3312_v20 = vadd.f32 %v3311_v18, %v2854_v16  ;;  %v3313_v21 = vpop.f32.mrb[29].mxu0 }
 0x4c5   :  { %v3314_v22 = vadd.f32 %v3313_v21, %v2858_v17  ;;  %v3315_v23 = vpop.f32.mrb[30].mxu0 }
 0x4c6   :  { %3363 = vst [vmem:[%s5661_s8 + $0x20] sm:$0xff] %v3312_v20  ;;  %v3316_v24 = vpop.f32.mrb[31].mxu0 }
 0x4c7   :  { %3364 = vst [vmem:[%s5661_s8 + $0x28] sm:$0xff] %v3314_v22 }
 0x4e3   :  { %v3352_v55 = vpop.f32.mrb[32].mxu0 }
 0x4e4   :  { %v3353_v30 = vadd.f32 %v3352_v55, %v2862_v27  ;;  %v3354_v31 = vpop.f32.mrb[33].mxu0 }
 0x4e5   :  { %v3355_v32 = vadd.f32 %v3354_v31, %v2866_v29  ;;  %v3356_v33 = vpop.f32.mrb[34].mxu0 }
 0x4e6   :  { %3365 = vst [vmem:[%s5661_s8 + $0x30] sm:$0xff] %v3353_v30  ;;  %v3357_v34 = vpop.f32.mrb[35].mxu0 }
 0x4e7   :  { %3366 = vst [vmem:[%s5661_s8 + $0x38] sm:$0xff] %v3355_v32 }
 0x4e8   :  { %3379 = vsyncpa [#allocation4], 1 }
 0x4e9   :  { %3380 = vsyncpa [#allocation6], 1 }

</bundles_post_ra>
